<compile_context>
chip_gen: v7x
topology: tpu7x:2x2x1
jax: 0.10.0
libtpu: 0.0.40
codegen_flags: <defaults>
</compile_context>

<pallas_src>
import jax
import jax.numpy as jnp
from jax.experimental import pallas as pl
from jax.experimental.pallas import tpu as pltpu


def _fused_repr_kernel(tok_smem, table_hbm, mask_ref, out_ref,
                       rows_vmem, copy_sems):
    """One grid step pools TB batch elements of one side (query or ad).

    tok_smem : (2*B*S,) int32 token ids (SMEM scalar prefetch); ad ids are
               pre-offset so they index the stacked table directly.
    table_hbm: (Vq+Va, D) f32 stacked embedding table (HBM, manual DMA).
    mask_ref : (1, TB, S) f32 attention-mask block (VMEM).
    out_ref  : (1, TB, D) f32 output block (VMEM).
    rows_vmem: (2, S, D)  f32 double-buffered scratch for gathered rows.
    copy_sems: (2,) DMA semaphores, one per buffer slot.
    """
    side = pl.program_id(0)          # 0 = query, 1 = ad
    bt = pl.program_id(1)            # batch tile index
    _, TB, S = mask_ref.shape
    D = out_ref.shape[-1]
    B = pl.num_programs(1) * TB
    tok_base = (side * B + bt * TB) * S

    def issue_gather(b, slot):
        # DMA the S embedding rows of local batch element b into `slot`.
        # All S copies share one semaphore; total signaled bytes = S*D*4.
        # NOTE: out-of-range token ids would DMA out of bounds (matches the
        # undefined behavior of nn.Embedding on invalid indices).
        # (Static Python loop is fine at demo S; use pl.loop for large S.)
        for s in range(S):
            tok = tok_smem[tok_base + b * S + s]
            pltpu.make_async_copy(
                table_hbm.at[pl.ds(tok, 1), :],
                rows_vmem.at[slot, pl.ds(s, 1), :],
                copy_sems.at[slot],
            ).start()

    def wait_gather(slot):
        # Single aggregate wait: descriptor size S*D*4 bytes equals the sum
        # of the S per-row copies issued against this slot's semaphore.
        pltpu.make_async_copy(
            table_hbm.at[pl.ds(0, S), :],
            rows_vmem.at[slot],
            copy_sems.at[slot],
        ).wait()

    issue_gather(0, 0)                       # prime the pipeline
    mask_tile = mask_ref[...]                # (1, TB, S), loaded once

    for b in range(TB):                      # static; TB is small
        slot = b & 1
        wait_gather(slot)
        if b + 1 < TB:
            issue_gather(b + 1, 1 - slot)    # prefetch next element's rows

        emb = rows_vmem[slot]                          # (S, D) f32
        m_row = mask_tile[0, b:b + 1, :]               # (1, S) f32
        # Masked sum as an MXU matvec (keeps VPU/XLU free for the DMA
        # address stream); denominator = number of unmasked positions.
        summed = jnp.dot(m_row, emb, preferred_element_type=jnp.float32)
        denom = jnp.maximum(jnp.sum(m_row, axis=1, keepdims=True), 1e-9)
        out_ref[0, pl.ds(b, 1), :] = summed * pl.reciprocal(denom, approx=True)


def _pad_seq(x, seq_len, fill):
    pad = seq_len - x.shape[1]
    if pad == 0:
        return x
    return jnp.pad(x, ((0, 0), (0, pad)), constant_values=fill)


def fused_query_ad_representations(query_tok, ad_tok, query_mask, ad_mask,
                                   stacked_table, ad_token_offset,
                                   *, batch_tile=None):
    """Fused Pallas equivalent of both RepresentationBuilder forward calls."""
    B, s_q = query_tok.shape
    b_a, s_a = ad_tok.shape
    assert b_a == B, "query/ad batch sizes must match"
    D = stacked_table.shape[1]

    # Pad the sequence axis to a common multiple of 8 (sublane-dense scratch,
    # layout-preserving views); pad positions get token 0 and mask 0 (no-op).
    S = ((max(s_q, s_a) + 7) // 8) * 8

    if batch_tile is None:
        batch_tile = B if B <= 8 else 8
    assert B % batch_tile == 0, "batch must be divisible by the batch tile"
    TB = batch_tile
    nbt = B // TB

    q_tok = _pad_seq(query_tok.astype(jnp.int32), S, 0)
    a_tok = _pad_seq(ad_tok.astype(jnp.int32), S, 0) + jnp.int32(ad_token_offset)
    tok_flat = jnp.stack([q_tok, a_tok]).reshape(-1)          # (2*B*S,) int32

    masks = jnp.stack([
        _pad_seq(query_mask.astype(jnp.float32), S, 0.0),
        _pad_seq(ad_mask.astype(jnp.float32), S, 0.0),
    ])                                                        # (2, B, S) f32

    # VMEM budget: double-buffered rows scratch + pipelined mask/out blocks
    # (mask block lane-padded to 128), plus headroom for internal scratch.
    vmem_limit = int(2 * S * D * 4
                     + 2 * TB * max(S, 128) * 4
                     + 2 * TB * D * 4
                     + (8 << 20))

    cost = pl.CostEstimate(
        flops=2 * (2 * B) * S * D,                 # (1,S)x(S,D) per element
        transcendentals=2 * B,                     # approx reciprocals
        bytes_accessed=(2 * B * S * D * 4          # gathered embedding rows
                        + masks.size * 4 + tok_flat.size * 4 + 2 * B * D * 4),
    )

    out = pl.pallas_call(
        _fused_repr_kernel,
        out_shape=jax.ShapeDtypeStruct((2, B, D), jnp.float32),
        grid_spec=pltpu.PrefetchScalarGridSpec(
            num_scalar_prefetch=1,
            grid=(2, nbt),                                     # (side, batch tile)
            in_specs=[
                pl.BlockSpec(memory_space=pl.ANY),             # stacked table (HBM)
                pl.BlockSpec((1, TB, S), lambda side, bt, tok: (side, bt, 0)),
            ],
            out_specs=pl.BlockSpec((1, TB, D),
                                   lambda side, bt, tok: (side, bt, 0)),
            scratch_shapes=[
                pltpu.VMEM((2, S, D), jnp.float32),            # double-buffered rows
                pltpu.SemaphoreType.DMA((2,)),                 # one sem per slot
            ],
        ),
        compiler_params=pltpu.CompilerParams(
            dimension_semantics=("parallel", "parallel"),
            vmem_limit_bytes=vmem_limit,
        ),
        cost_estimate=cost,
    )(tok_flat, stacked_table, masks)

    return out[0], out[1]


class QueryAdCoordinator:
    """JAX/Pallas mirror of the PyTorch QueryAdCoordinator forward pass."""

    def __init__(self, query_vocab_size, ad_vocab_size, embedding_dim, key,
                 learning_rate=1e-3):
        del learning_rate
        # TODO(synk): CosineEmbeddingLoss / Adam optimizer in the PyTorch
        # module are training-only state, not part of the forward pass.
        kq, ka = jax.random.split(key)
        self.query_embedding = jax.random.normal(
            kq, (query_vocab_size, embedding_dim), dtype=jnp.float32)
        self.ad_embedding = jax.random.normal(
            ka, (ad_vocab_size, embedding_dim), dtype=jnp.float32)
        # Stack once at init so the kernel has a single gather path; ad token
        # ids are offset by query_vocab_size at call time.
        self._stacked_table = jnp.concatenate(
            [self.query_embedding, self.ad_embedding], axis=0)
        self._ad_token_offset = query_vocab_size

    def forward(self, query, ad, query_attention_mask1, ad_attention_mask):
        return fused_query_ad_representations(
            query, ad, query_attention_mask1, ad_attention_mask,
            self._stacked_table, self._ad_token_offset)

    __call__ = forward


def _reference(tokens, mask, emb):
    # Pure-JAX reference for validation.
    gathered = emb[tokens]                                   # (B, S, D)
    m = mask.astype(jnp.float32)[..., None]
    summed = jnp.sum(gathered * m, axis=1)
    denom = jnp.maximum(
        jnp.sum(mask.astype(jnp.float32), axis=1, keepdims=True), 1e-9)
    return summed / denom


if __name__ == "__main__":
    key = jax.random.PRNGKey(0)
    k_params, k_q, k_a, k_mq, k_ma = jax.random.split(key, 5)

    B = 2
    SEQ_Q, SEQ_A = 8, 8
    QUERY_VOCAB, AD_VOCAB = 512, 384
    EMB_DIM = 128     # multiple of 128 -> lane-dense output stores

    model = QueryAdCoordinator(QUERY_VOCAB, AD_VOCAB, EMB_DIM, k_params)

    query = jax.random.randint(k_q, (B, SEQ_Q), 0, QUERY_VOCAB, dtype=jnp.int32)
    ad = jax.random.randint(k_a, (B, SEQ_A), 0, AD_VOCAB, dtype=jnp.int32)
    query_mask = (jax.random.uniform(k_mq, (B, SEQ_Q)) > 0.25).astype(jnp.float32)
    ad_mask = (jax.random.uniform(k_ma, (B, SEQ_A)) > 0.25).astype(jnp.float32)
    # Ensure at least one valid position per row.
    query_mask = query_mask.at[:, 0].set(1.0)
    ad_mask = ad_mask.at[:, 0].set(1.0)

    query_repr, ad_repr = model(query, ad, query_mask, ad_mask)
    jax.block_until_ready((query_repr, ad_repr))

    ref_q = _reference(query, query_mask, model.query_embedding)
    ref_a = _reference(ad, ad_mask, model.ad_embedding)
    assert query_repr.shape == (B, EMB_DIM) and ad_repr.shape == (B, EMB_DIM)
    # Tolerance absorbs the approx reciprocal and MXU pooling at default
    # precision; a wrong gather / mask would produce O(1) errors.
    assert jnp.allclose(query_repr, ref_q, atol=5e-3, rtol=5e-3), \
        float(jnp.max(jnp.abs(query_repr - ref_q)))
    assert jnp.allclose(ad_repr, ref_a, atol=5e-3, rtol=5e-3), \
        float(jnp.max(jnp.abs(ad_repr - ref_a)))

    print("KERNEL_OK")
</pallas_src>

<mosaic_0001>
module attributes {stable_mosaic.version = 11 : i64} {
  func.func @_fused_repr_kernel(%arg0: i32, %arg1: i32, %arg2: memref<32xi32, #tpu.memory_space<smem>>, %arg3: memref<896x128xf32, #tpu.memory_space<any>>, %arg4: memref<1x2x8xf32, #tpu.memory_space<vmem>>, %arg5: memref<1x2x128xf32, #tpu.memory_space<vmem>>, %arg6: memref<2x8x128xf32, #tpu.memory_space<vmem>>, %arg7: memref<2x!tpu.dma_semaphore, #tpu.memory_space<semaphore_mem>>) attributes {dimension_semantics = [#tpu.dimension_semantics<parallel>, #tpu.dimension_semantics<parallel>], iteration_bounds = array<i64: 2, 1>, scalar_prefetch = 1 : i64, scratch_operands = 2 : i64, tpu.core_type = #tpu.core_type<tc>, window_params = [{}, {transform_indices = @transform_1, window_bounds = array<i64: 1, 2, 8>}, {transform_indices = @transform_2, window_bounds = array<i64: 1, 2, 128>}]} {
    %c2_i32 = arith.constant 2 : i32
    %0 = arith.muli %arg0, %c2_i32 : i32
    %c2_i32_0 = arith.constant 2 : i32
    %1 = arith.muli %arg1, %c2_i32_0 : i32
    %2 = arith.addi %0, %1 : i32
    %c8_i32 = arith.constant 8 : i32
    %3 = arith.muli %2, %c8_i32 : i32
    %c0_i32 = arith.constant 0 : i32
    %4 = arith.addi %3, %c0_i32 : i32
    %c0_i32_1 = arith.constant 0 : i32
    %5 = arith.addi %4, %c0_i32_1 : i32
    %6 = arith.index_cast %5 : i32 to index
    %7 = memref.load %arg2[%6] : memref<32xi32, #tpu.memory_space<smem>>
    %c0_i32_2 = arith.constant 0 : i32
    %c0_i32_3 = arith.constant 0 : i32
    %c0_i32_4 = arith.constant 0 : i32
    %8 = tpu.memref_slice %arg3[%7, %c0_i32_4] : memref<896x128xf32, #tpu.memory_space<any>> -> memref<1x128xf32, #tpu.memory_space<any>>
    %c0_i32_5 = arith.constant 0 : i32
    %c0_i32_6 = arith.constant 0 : i32
    %9 = tpu.memref_slice %arg6[%c0_i32_2, %c0_i32_5, %c0_i32_6] : memref<2x8x128xf32, #tpu.memory_space<vmem>> -> memref<1x1x128xf32, #tpu.memory_space<vmem>>
    %10 = tpu.memref_squeeze %9 : memref<1x1x128xf32, #tpu.memory_space<vmem>> -> memref<1x128xf32, #tpu.memory_space<vmem>>
    %11 = tpu.memref_slice %arg7[%c0_i32_3] : memref<2x!tpu.dma_semaphore, #tpu.memory_space<semaphore_mem>> -> memref<1x!tpu.dma_semaphore, #tpu.memory_space<semaphore_mem>>
    %12 = tpu.memref_squeeze %11 : memref<1x!tpu.dma_semaphore, #tpu.memory_space<semaphore_mem>> -> memref<!tpu.dma_semaphore, #tpu.memory_space<semaphore_mem>>
    tpu.enqueue_dma source(%8 : memref<1x128xf32, #tpu.memory_space<any>>) target(%10 : memref<1x128xf32, #tpu.memory_space<vmem>>) target_semaphore(%12 : memref<!tpu.dma_semaphore, #tpu.memory_space<semaphore_mem>>)
    %c0_i32_7 = arith.constant 0 : i32
    %13 = arith.addi %3, %c0_i32_7 : i32
    %c1_i32 = arith.constant 1 : i32
    %14 = arith.addi %13, %c1_i32 : i32
    %15 = arith.index_cast %14 : i32 to index
    %16 = memref.load %arg2[%15] : memref<32xi32, #tpu.memory_space<smem>>
    %c0_i32_8 = arith.constant 0 : i32
    %c0_i32_9 = arith.constant 0 : i32
    %c0_i32_10 = arith.constant 0 : i32
    %17 = tpu.memref_slice %arg3[%16, %c0_i32_10] : memref<896x128xf32, #tpu.memory_space<any>> -> memref<1x128xf32, #tpu.memory_space<any>>
    %c1_i32_11 = arith.constant 1 : i32
    %c0_i32_12 = arith.constant 0 : i32
    %18 = tpu.memref_slice %arg6[%c0_i32_8, %c1_i32_11, %c0_i32_12] : memref<2x8x128xf32, #tpu.memory_space<vmem>> -> memref<1x1x128xf32, #tpu.memory_space<vmem>>
    %19 = tpu.memref_squeeze %18 : memref<1x1x128xf32, #tpu.memory_space<vmem>> -> memref<1x128xf32, #tpu.memory_space<vmem>>
    %20 = tpu.memref_slice %arg7[%c0_i32_9] : memref<2x!tpu.dma_semaphore, #tpu.memory_space<semaphore_mem>> -> memref<1x!tpu.dma_semaphore, #tpu.memory_space<semaphore_mem>>
    %21 = tpu.memref_squeeze %20 : memref<1x!tpu.dma_semaphore, #tpu.memory_space<semaphore_mem>> -> memref<!tpu.dma_semaphore, #tpu.memory_space<semaphore_mem>>
    tpu.enqueue_dma source(%17 : memref<1x128xf32, #tpu.memory_space<any>>) target(%19 : memref<1x128xf32, #tpu.memory_space<vmem>>) target_semaphore(%21 : memref<!tpu.dma_semaphore, #tpu.memory_space<semaphore_mem>>)
    %c0_i32_13 = arith.constant 0 : i32
    %22 = arith.addi %3, %c0_i32_13 : i32
    %c2_i32_14 = arith.constant 2 : i32
    %23 = arith.addi %22, %c2_i32_14 : i32
    %24 = arith.index_cast %23 : i32 to index
    %25 = memref.load %arg2[%24] : memref<32xi32, #tpu.memory_space<smem>>
    %c0_i32_15 = arith.constant 0 : i32
    %c0_i32_16 = arith.constant 0 : i32
    %c0_i32_17 = arith.constant 0 : i32
    %26 = tpu.memref_slice %arg3[%25, %c0_i32_17] : memref<896x128xf32, #tpu.memory_space<any>> -> memref<1x128xf32, #tpu.memory_space<any>>
    %c2_i32_18 = arith.constant 2 : i32
    %c0_i32_19 = arith.constant 0 : i32
    %27 = tpu.memref_slice %arg6[%c0_i32_15, %c2_i32_18, %c0_i32_19] : memref<2x8x128xf32, #tpu.memory_space<vmem>> -> memref<1x1x128xf32, #tpu.memory_space<vmem>>
    %28 = tpu.memref_squeeze %27 : memref<1x1x128xf32, #tpu.memory_space<vmem>> -> memref<1x128xf32, #tpu.memory_space<vmem>>
    %29 = tpu.memref_slice %arg7[%c0_i32_16] : memref<2x!tpu.dma_semaphore, #tpu.memory_space<semaphore_mem>> -> memref<1x!tpu.dma_semaphore, #tpu.memory_space<semaphore_mem>>
    %30 = tpu.memref_squeeze %29 : memref<1x!tpu.dma_semaphore, #tpu.memory_space<semaphore_mem>> -> memref<!tpu.dma_semaphore, #tpu.memory_space<semaphore_mem>>
    tpu.enqueue_dma source(%26 : memref<1x128xf32, #tpu.memory_space<any>>) target(%28 : memref<1x128xf32, #tpu.memory_space<vmem>>) target_semaphore(%30 : memref<!tpu.dma_semaphore, #tpu.memory_space<semaphore_mem>>)
    %c0_i32_20 = arith.constant 0 : i32
    %31 = arith.addi %3, %c0_i32_20 : i32
    %c3_i32 = arith.constant 3 : i32
    %32 = arith.addi %31, %c3_i32 : i32
    %33 = arith.index_cast %32 : i32 to index
    %34 = memref.load %arg2[%33] : memref<32xi32, #tpu.memory_space<smem>>
    %c0_i32_21 = arith.constant 0 : i32
    %c0_i32_22 = arith.constant 0 : i32
    %c0_i32_23 = arith.constant 0 : i32
    %35 = tpu.memref_slice %arg3[%34, %c0_i32_23] : memref<896x128xf32, #tpu.memory_space<any>> -> memref<1x128xf32, #tpu.memory_space<any>>
    %c3_i32_24 = arith.constant 3 : i32
    %c0_i32_25 = arith.constant 0 : i32
    %36 = tpu.memref_slice %arg6[%c0_i32_21, %c3_i32_24, %c0_i32_25] : memref<2x8x128xf32, #tpu.memory_space<vmem>> -> memref<1x1x128xf32, #tpu.memory_space<vmem>>
    %37 = tpu.memref_squeeze %36 : memref<1x1x128xf32, #tpu.memory_space<vmem>> -> memref<1x128xf32, #tpu.memory_space<vmem>>
    %38 = tpu.memref_slice %arg7[%c0_i32_22] : memref<2x!tpu.dma_semaphore, #tpu.memory_space<semaphore_mem>> -> memref<1x!tpu.dma_semaphore, #tpu.memory_space<semaphore_mem>>
    %39 = tpu.memref_squeeze %38 : memref<1x!tpu.dma_semaphore, #tpu.memory_space<semaphore_mem>> -> memref<!tpu.dma_semaphore, #tpu.memory_space<semaphore_mem>>
    tpu.enqueue_dma source(%35 : memref<1x128xf32, #tpu.memory_space<any>>) target(%37 : memref<1x128xf32, #tpu.memory_space<vmem>>) target_semaphore(%39 : memref<!tpu.dma_semaphore, #tpu.memory_space<semaphore_mem>>)
    %c0_i32_26 = arith.constant 0 : i32
    %40 = arith.addi %3, %c0_i32_26 : i32
    %c4_i32 = arith.constant 4 : i32
    %41 = arith.addi %40, %c4_i32 : i32
    %42 = arith.index_cast %41 : i32 to index
    %43 = memref.load %arg2[%42] : memref<32xi32, #tpu.memory_space<smem>>
    %c0_i32_27 = arith.constant 0 : i32
    %c0_i32_28 = arith.constant 0 : i32
    %c0_i32_29 = arith.constant 0 : i32
    %44 = tpu.memref_slice %arg3[%43, %c0_i32_29] : memref<896x128xf32, #tpu.memory_space<any>> -> memref<1x128xf32, #tpu.memory_space<any>>
    %c4_i32_30 = arith.constant 4 : i32
    %c0_i32_31 = arith.constant 0 : i32
    %45 = tpu.memref_slice %arg6[%c0_i32_27, %c4_i32_30, %c0_i32_31] : memref<2x8x128xf32, #tpu.memory_space<vmem>> -> memref<1x1x128xf32, #tpu.memory_space<vmem>>
    %46 = tpu.memref_squeeze %45 : memref<1x1x128xf32, #tpu.memory_space<vmem>> -> memref<1x128xf32, #tpu.memory_space<vmem>>
    %47 = tpu.memref_slice %arg7[%c0_i32_28] : memref<2x!tpu.dma_semaphore, #tpu.memory_space<semaphore_mem>> -> memref<1x!tpu.dma_semaphore, #tpu.memory_space<semaphore_mem>>
    %48 = tpu.memref_squeeze %47 : memref<1x!tpu.dma_semaphore, #tpu.memory_space<semaphore_mem>> -> memref<!tpu.dma_semaphore, #tpu.memory_space<semaphore_mem>>
    tpu.enqueue_dma source(%44 : memref<1x128xf32, #tpu.memory_space<any>>) target(%46 : memref<1x128xf32, #tpu.memory_space<vmem>>) target_semaphore(%48 : memref<!tpu.dma_semaphore, #tpu.memory_space<semaphore_mem>>)
    %c0_i32_32 = arith.constant 0 : i32
    %49 = arith.addi %3, %c0_i32_32 : i32
    %c5_i32 = arith.constant 5 : i32
    %50 = arith.addi %49, %c5_i32 : i32
    %51 = arith.index_cast %50 : i32 to index
    %52 = memref.load %arg2[%51] : memref<32xi32, #tpu.memory_space<smem>>
    %c0_i32_33 = arith.constant 0 : i32
    %c0_i32_34 = arith.constant 0 : i32
    %c0_i32_35 = arith.constant 0 : i32
    %53 = tpu.memref_slice %arg3[%52, %c0_i32_35] : memref<896x128xf32, #tpu.memory_space<any>> -> memref<1x128xf32, #tpu.memory_space<any>>
    %c5_i32_36 = arith.constant 5 : i32
    %c0_i32_37 = arith.constant 0 : i32
    %54 = tpu.memref_slice %arg6[%c0_i32_33, %c5_i32_36, %c0_i32_37] : memref<2x8x128xf32, #tpu.memory_space<vmem>> -> memref<1x1x128xf32, #tpu.memory_space<vmem>>
    %55 = tpu.memref_squeeze %54 : memref<1x1x128xf32, #tpu.memory_space<vmem>> -> memref<1x128xf32, #tpu.memory_space<vmem>>
    %56 = tpu.memref_slice %arg7[%c0_i32_34] : memref<2x!tpu.dma_semaphore, #tpu.memory_space<semaphore_mem>> -> memref<1x!tpu.dma_semaphore, #tpu.memory_space<semaphore_mem>>
    %57 = tpu.memref_squeeze %56 : memref<1x!tpu.dma_semaphore, #tpu.memory_space<semaphore_mem>> -> memref<!tpu.dma_semaphore, #tpu.memory_space<semaphore_mem>>
    tpu.enqueue_dma source(%53 : memref<1x128xf32, #tpu.memory_space<any>>) target(%55 : memref<1x128xf32, #tpu.memory_space<vmem>>) target_semaphore(%57 : memref<!tpu.dma_semaphore, #tpu.memory_space<semaphore_mem>>)
    %c0_i32_38 = arith.constant 0 : i32
    %58 = arith.addi %3, %c0_i32_38 : i32
    %c6_i32 = arith.constant 6 : i32
    %59 = arith.addi %58, %c6_i32 : i32
    %60 = arith.index_cast %59 : i32 to index
    %61 = memref.load %arg2[%60] : memref<32xi32, #tpu.memory_space<smem>>
    %c0_i32_39 = arith.constant 0 : i32
    %c0_i32_40 = arith.constant 0 : i32
    %c0_i32_41 = arith.constant 0 : i32
    %62 = tpu.memref_slice %arg3[%61, %c0_i32_41] : memref<896x128xf32, #tpu.memory_space<any>> -> memref<1x128xf32, #tpu.memory_space<any>>
    %c6_i32_42 = arith.constant 6 : i32
    %c0_i32_43 = arith.constant 0 : i32
    %63 = tpu.memref_slice %arg6[%c0_i32_39, %c6_i32_42, %c0_i32_43] : memref<2x8x128xf32, #tpu.memory_space<vmem>> -> memref<1x1x128xf32, #tpu.memory_space<vmem>>
    %64 = tpu.memref_squeeze %63 : memref<1x1x128xf32, #tpu.memory_space<vmem>> -> memref<1x128xf32, #tpu.memory_space<vmem>>
    %65 = tpu.memref_slice %arg7[%c0_i32_40] : memref<2x!tpu.dma_semaphore, #tpu.memory_space<semaphore_mem>> -> memref<1x!tpu.dma_semaphore, #tpu.memory_space<semaphore_mem>>
    %66 = tpu.memref_squeeze %65 : memref<1x!tpu.dma_semaphore, #tpu.memory_space<semaphore_mem>> -> memref<!tpu.dma_semaphore, #tpu.memory_space<semaphore_mem>>
    tpu.enqueue_dma source(%62 : memref<1x128xf32, #tpu.memory_space<any>>) target(%64 : memref<1x128xf32, #tpu.memory_space<vmem>>) target_semaphore(%66 : memref<!tpu.dma_semaphore, #tpu.memory_space<semaphore_mem>>)
    %c0_i32_44 = arith.constant 0 : i32
    %67 = arith.addi %3, %c0_i32_44 : i32
    %c7_i32 = arith.constant 7 : i32
    %68 = arith.addi %67, %c7_i32 : i32
    %69 = arith.index_cast %68 : i32 to index
    %70 = memref.load %arg2[%69] : memref<32xi32, #tpu.memory_space<smem>>
    %c0_i32_45 = arith.constant 0 : i32
    %c0_i32_46 = arith.constant 0 : i32
    %c0_i32_47 = arith.constant 0 : i32
    %71 = tpu.memref_slice %arg3[%70, %c0_i32_47] : memref<896x128xf32, #tpu.memory_space<any>> -> memref<1x128xf32, #tpu.memory_space<any>>
    %c7_i32_48 = arith.constant 7 : i32
    %c0_i32_49 = arith.constant 0 : i32
    %72 = tpu.memref_slice %arg6[%c0_i32_45, %c7_i32_48, %c0_i32_49] : memref<2x8x128xf32, #tpu.memory_space<vmem>> -> memref<1x1x128xf32, #tpu.memory_space<vmem>>
    %73 = tpu.memref_squeeze %72 : memref<1x1x128xf32, #tpu.memory_space<vmem>> -> memref<1x128xf32, #tpu.memory_space<vmem>>
    %74 = tpu.memref_slice %arg7[%c0_i32_46] : memref<2x!tpu.dma_semaphore, #tpu.memory_space<semaphore_mem>> -> memref<1x!tpu.dma_semaphore, #tpu.memory_space<semaphore_mem>>
    %75 = tpu.memref_squeeze %74 : memref<1x!tpu.dma_semaphore, #tpu.memory_space<semaphore_mem>> -> memref<!tpu.dma_semaphore, #tpu.memory_space<semaphore_mem>>
    tpu.enqueue_dma source(%71 : memref<1x128xf32, #tpu.memory_space<any>>) target(%73 : memref<1x128xf32, #tpu.memory_space<vmem>>) target_semaphore(%75 : memref<!tpu.dma_semaphore, #tpu.memory_space<semaphore_mem>>)
    %c0 = arith.constant 0 : index
    %c0_50 = arith.constant 0 : index
    %c0_51 = arith.constant 0 : index
    %76 = vector.load %arg4[%c0, %c0_50, %c0_51] : memref<1x2x8xf32, #tpu.memory_space<vmem>>, vector<1x2x8xf32>
    %c0_i32_52 = arith.constant 0 : i32
    %c0_i32_53 = arith.constant 0 : i32
    %c0_i32_54 = arith.constant 0 : i32
    %c0_i32_55 = arith.constant 0 : i32
    %77 = tpu.memref_slice %arg3[%c0_i32_54, %c0_i32_55] : memref<896x128xf32, #tpu.memory_space<any>> -> memref<8x128xf32, #tpu.memory_space<any>>
    %c0_i32_56 = arith.constant 0 : i32
    %c0_i32_57 = arith.constant 0 : i32
    %78 = tpu.memref_slice %arg6[%c0_i32_52, %c0_i32_56, %c0_i32_57] : memref<2x8x128xf32, #tpu.memory_space<vmem>> -> memref<1x8x128xf32, #tpu.memory_space<vmem>>
    %79 = tpu.memref_squeeze %78 : memref<1x8x128xf32, #tpu.memory_space<vmem>> -> memref<8x128xf32, #tpu.memory_space<vmem>>
    %80 = tpu.memref_slice %arg7[%c0_i32_53] : memref<2x!tpu.dma_semaphore, #tpu.memory_space<semaphore_mem>> -> memref<1x!tpu.dma_semaphore, #tpu.memory_space<semaphore_mem>>
    %81 = tpu.memref_squeeze %80 : memref<1x!tpu.dma_semaphore, #tpu.memory_space<semaphore_mem>> -> memref<!tpu.dma_semaphore, #tpu.memory_space<semaphore_mem>>
    tpu.wait_dma2 semaphore(%81 : memref<!tpu.dma_semaphore, #tpu.memory_space<semaphore_mem>>) src(%77 : memref<8x128xf32, #tpu.memory_space<any>>) dst(%79 : memref<8x128xf32, #tpu.memory_space<vmem>>)
    %c8_i32_58 = arith.constant 8 : i32
    %82 = arith.addi %3, %c8_i32_58 : i32
    %c0_i32_59 = arith.constant 0 : i32
    %83 = arith.addi %82, %c0_i32_59 : i32
    %84 = arith.index_cast %83 : i32 to index
    %85 = memref.load %arg2[%84] : memref<32xi32, #tpu.memory_space<smem>>
    %c1_i32_60 = arith.constant 1 : i32
    %c1_i32_61 = arith.constant 1 : i32
    %c0_i32_62 = arith.constant 0 : i32
    %86 = tpu.memref_slice %arg3[%85, %c0_i32_62] : memref<896x128xf32, #tpu.memory_space<any>> -> memref<1x128xf32, #tpu.memory_space<any>>
    %c0_i32_63 = arith.constant 0 : i32
    %c0_i32_64 = arith.constant 0 : i32
    %87 = tpu.memref_slice %arg6[%c1_i32_60, %c0_i32_63, %c0_i32_64] : memref<2x8x128xf32, #tpu.memory_space<vmem>> -> memref<1x1x128xf32, #tpu.memory_space<vmem>>
    %88 = tpu.memref_squeeze %87 : memref<1x1x128xf32, #tpu.memory_space<vmem>> -> memref<1x128xf32, #tpu.memory_space<vmem>>
    %89 = tpu.memref_slice %arg7[%c1_i32_61] : memref<2x!tpu.dma_semaphore, #tpu.memory_space<semaphore_mem>> -> memref<1x!tpu.dma_semaphore, #tpu.memory_space<semaphore_mem>>
    %90 = tpu.memref_squeeze %89 : memref<1x!tpu.dma_semaphore, #tpu.memory_space<semaphore_mem>> -> memref<!tpu.dma_semaphore, #tpu.memory_space<semaphore_mem>>
    tpu.enqueue_dma source(%86 : memref<1x128xf32, #tpu.memory_space<any>>) target(%88 : memref<1x128xf32, #tpu.memory_space<vmem>>) target_semaphore(%90 : memref<!tpu.dma_semaphore, #tpu.memory_space<semaphore_mem>>)
    %c8_i32_65 = arith.constant 8 : i32
    %91 = arith.addi %3, %c8_i32_65 : i32
    %c1_i32_66 = arith.constant 1 : i32
    %92 = arith.addi %91, %c1_i32_66 : i32
    %93 = arith.index_cast %92 : i32 to index
    %94 = memref.load %arg2[%93] : memref<32xi32, #tpu.memory_space<smem>>
    %c1_i32_67 = arith.constant 1 : i32
    %c1_i32_68 = arith.constant 1 : i32
    %c0_i32_69 = arith.constant 0 : i32
    %95 = tpu.memref_slice %arg3[%94, %c0_i32_69] : memref<896x128xf32, #tpu.memory_space<any>> -> memref<1x128xf32, #tpu.memory_space<any>>
    %c1_i32_70 = arith.constant 1 : i32
    %c0_i32_71 = arith.constant 0 : i32
    %96 = tpu.memref_slice %arg6[%c1_i32_67, %c1_i32_70, %c0_i32_71] : memref<2x8x128xf32, #tpu.memory_space<vmem>> -> memref<1x1x128xf32, #tpu.memory_space<vmem>>
    %97 = tpu.memref_squeeze %96 : memref<1x1x128xf32, #tpu.memory_space<vmem>> -> memref<1x128xf32, #tpu.memory_space<vmem>>
    %98 = tpu.memref_slice %arg7[%c1_i32_68] : memref<2x!tpu.dma_semaphore, #tpu.memory_space<semaphore_mem>> -> memref<1x!tpu.dma_semaphore, #tpu.memory_space<semaphore_mem>>
    %99 = tpu.memref_squeeze %98 : memref<1x!tpu.dma_semaphore, #tpu.memory_space<semaphore_mem>> -> memref<!tpu.dma_semaphore, #tpu.memory_space<semaphore_mem>>
    tpu.enqueue_dma source(%95 : memref<1x128xf32, #tpu.memory_space<any>>) target(%97 : memref<1x128xf32, #tpu.memory_space<vmem>>) target_semaphore(%99 : memref<!tpu.dma_semaphore, #tpu.memory_space<semaphore_mem>>)
    %c8_i32_72 = arith.constant 8 : i32
    %100 = arith.addi %3, %c8_i32_72 : i32
    %c2_i32_73 = arith.constant 2 : i32
    %101 = arith.addi %100, %c2_i32_73 : i32
    %102 = arith.index_cast %101 : i32 to index
    %103 = memref.load %arg2[%102] : memref<32xi32, #tpu.memory_space<smem>>
    %c1_i32_74 = arith.constant 1 : i32
    %c1_i32_75 = arith.constant 1 : i32
    %c0_i32_76 = arith.constant 0 : i32
    %104 = tpu.memref_slice %arg3[%103, %c0_i32_76] : memref<896x128xf32, #tpu.memory_space<any>> -> memref<1x128xf32, #tpu.memory_space<any>>
    %c2_i32_77 = arith.constant 2 : i32
    %c0_i32_78 = arith.constant 0 : i32
    %105 = tpu.memref_slice %arg6[%c1_i32_74, %c2_i32_77, %c0_i32_78] : memref<2x8x128xf32, #tpu.memory_space<vmem>> -> memref<1x1x128xf32, #tpu.memory_space<vmem>>
    %106 = tpu.memref_squeeze %105 : memref<1x1x128xf32, #tpu.memory_space<vmem>> -> memref<1x128xf32, #tpu.memory_space<vmem>>
    %107 = tpu.memref_slice %arg7[%c1_i32_75] : memref<2x!tpu.dma_semaphore, #tpu.memory_space<semaphore_mem>> -> memref<1x!tpu.dma_semaphore, #tpu.memory_space<semaphore_mem>>
    %108 = tpu.memref_squeeze %107 : memref<1x!tpu.dma_semaphore, #tpu.memory_space<semaphore_mem>> -> memref<!tpu.dma_semaphore, #tpu.memory_space<semaphore_mem>>
    tpu.enqueue_dma source(%104 : memref<1x128xf32, #tpu.memory_space<any>>) target(%106 : memref<1x128xf32, #tpu.memory_space<vmem>>) target_semaphore(%108 : memref<!tpu.dma_semaphore, #tpu.memory_space<semaphore_mem>>)
    %c8_i32_79 = arith.constant 8 : i32
    %109 = arith.addi %3, %c8_i32_79 : i32
    %c3_i32_80 = arith.constant 3 : i32
    %110 = arith.addi %109, %c3_i32_80 : i32
    %111 = arith.index_cast %110 : i32 to index
    %112 = memref.load %arg2[%111] : memref<32xi32, #tpu.memory_space<smem>>
    %c1_i32_81 = arith.constant 1 : i32
    %c1_i32_82 = arith.constant 1 : i32
    %c0_i32_83 = arith.constant 0 : i32
    %113 = tpu.memref_slice %arg3[%112, %c0_i32_83] : memref<896x128xf32, #tpu.memory_space<any>> -> memref<1x128xf32, #tpu.memory_space<any>>
    %c3_i32_84 = arith.constant 3 : i32
    %c0_i32_85 = arith.constant 0 : i32
    %114 = tpu.memref_slice %arg6[%c1_i32_81, %c3_i32_84, %c0_i32_85] : memref<2x8x128xf32, #tpu.memory_space<vmem>> -> memref<1x1x128xf32, #tpu.memory_space<vmem>>
    %115 = tpu.memref_squeeze %114 : memref<1x1x128xf32, #tpu.memory_space<vmem>> -> memref<1x128xf32, #tpu.memory_space<vmem>>
    %116 = tpu.memref_slice %arg7[%c1_i32_82] : memref<2x!tpu.dma_semaphore, #tpu.memory_space<semaphore_mem>> -> memref<1x!tpu.dma_semaphore, #tpu.memory_space<semaphore_mem>>
    %117 = tpu.memref_squeeze %116 : memref<1x!tpu.dma_semaphore, #tpu.memory_space<semaphore_mem>> -> memref<!tpu.dma_semaphore, #tpu.memory_space<semaphore_mem>>
    tpu.enqueue_dma source(%113 : memref<1x128xf32, #tpu.memory_space<any>>) target(%115 : memref<1x128xf32, #tpu.memory_space<vmem>>) target_semaphore(%117 : memref<!tpu.dma_semaphore, #tpu.memory_space<semaphore_mem>>)
    %c8_i32_86 = arith.constant 8 : i32
    %118 = arith.addi %3, %c8_i32_86 : i32
    %c4_i32_87 = arith.constant 4 : i32
    %119 = arith.addi %118, %c4_i32_87 : i32
    %120 = arith.index_cast %119 : i32 to index
    %121 = memref.load %arg2[%120] : memref<32xi32, #tpu.memory_space<smem>>
    %c1_i32_88 = arith.constant 1 : i32
    %c1_i32_89 = arith.constant 1 : i32
    %c0_i32_90 = arith.constant 0 : i32
    %122 = tpu.memref_slice %arg3[%121, %c0_i32_90] : memref<896x128xf32, #tpu.memory_space<any>> -> memref<1x128xf32, #tpu.memory_space<any>>
    %c4_i32_91 = arith.constant 4 : i32
    %c0_i32_92 = arith.constant 0 : i32
    %123 = tpu.memref_slice %arg6[%c1_i32_88, %c4_i32_91, %c0_i32_92] : memref<2x8x128xf32, #tpu.memory_space<vmem>> -> memref<1x1x128xf32, #tpu.memory_space<vmem>>
    %124 = tpu.memref_squeeze %123 : memref<1x1x128xf32, #tpu.memory_space<vmem>> -> memref<1x128xf32, #tpu.memory_space<vmem>>
    %125 = tpu.memref_slice %arg7[%c1_i32_89] : memref<2x!tpu.dma_semaphore, #tpu.memory_space<semaphore_mem>> -> memref<1x!tpu.dma_semaphore, #tpu.memory_space<semaphore_mem>>
    %126 = tpu.memref_squeeze %125 : memref<1x!tpu.dma_semaphore, #tpu.memory_space<semaphore_mem>> -> memref<!tpu.dma_semaphore, #tpu.memory_space<semaphore_mem>>
    tpu.enqueue_dma source(%122 : memref<1x128xf32, #tpu.memory_space<any>>) target(%124 : memref<1x128xf32, #tpu.memory_space<vmem>>) target_semaphore(%126 : memref<!tpu.dma_semaphore, #tpu.memory_space<semaphore_mem>>)
    %c8_i32_93 = arith.constant 8 : i32
    %127 = arith.addi %3, %c8_i32_93 : i32
    %c5_i32_94 = arith.constant 5 : i32
    %128 = arith.addi %127, %c5_i32_94 : i32
    %129 = arith.index_cast %128 : i32 to index
    %130 = memref.load %arg2[%129] : memref<32xi32, #tpu.memory_space<smem>>
    %c1_i32_95 = arith.constant 1 : i32
    %c1_i32_96 = arith.constant 1 : i32
    %c0_i32_97 = arith.constant 0 : i32
    %131 = tpu.memref_slice %arg3[%130, %c0_i32_97] : memref<896x128xf32, #tpu.memory_space<any>> -> memref<1x128xf32, #tpu.memory_space<any>>
    %c5_i32_98 = arith.constant 5 : i32
    %c0_i32_99 = arith.constant 0 : i32
    %132 = tpu.memref_slice %arg6[%c1_i32_95, %c5_i32_98, %c0_i32_99] : memref<2x8x128xf32, #tpu.memory_space<vmem>> -> memref<1x1x128xf32, #tpu.memory_space<vmem>>
    %133 = tpu.memref_squeeze %132 : memref<1x1x128xf32, #tpu.memory_space<vmem>> -> memref<1x128xf32, #tpu.memory_space<vmem>>
    %134 = tpu.memref_slice %arg7[%c1_i32_96] : memref<2x!tpu.dma_semaphore, #tpu.memory_space<semaphore_mem>> -> memref<1x!tpu.dma_semaphore, #tpu.memory_space<semaphore_mem>>
    %135 = tpu.memref_squeeze %134 : memref<1x!tpu.dma_semaphore, #tpu.memory_space<semaphore_mem>> -> memref<!tpu.dma_semaphore, #tpu.memory_space<semaphore_mem>>
    tpu.enqueue_dma source(%131 : memref<1x128xf32, #tpu.memory_space<any>>) target(%133 : memref<1x128xf32, #tpu.memory_space<vmem>>) target_semaphore(%135 : memref<!tpu.dma_semaphore, #tpu.memory_space<semaphore_mem>>)
    %c8_i32_100 = arith.constant 8 : i32
    %136 = arith.addi %3, %c8_i32_100 : i32
    %c6_i32_101 = arith.constant 6 : i32
    %137 = arith.addi %136, %c6_i32_101 : i32
    %138 = arith.index_cast %137 : i32 to index
    %139 = memref.load %arg2[%138] : memref<32xi32, #tpu.memory_space<smem>>
    %c1_i32_102 = arith.constant 1 : i32
    %c1_i32_103 = arith.constant 1 : i32
    %c0_i32_104 = arith.constant 0 : i32
    %140 = tpu.memref_slice %arg3[%139, %c0_i32_104] : memref<896x128xf32, #tpu.memory_space<any>> -> memref<1x128xf32, #tpu.memory_space<any>>
    %c6_i32_105 = arith.constant 6 : i32
    %c0_i32_106 = arith.constant 0 : i32
    %141 = tpu.memref_slice %arg6[%c1_i32_102, %c6_i32_105, %c0_i32_106] : memref<2x8x128xf32, #tpu.memory_space<vmem>> -> memref<1x1x128xf32, #tpu.memory_space<vmem>>
    %142 = tpu.memref_squeeze %141 : memref<1x1x128xf32, #tpu.memory_space<vmem>> -> memref<1x128xf32, #tpu.memory_space<vmem>>
    %143 = tpu.memref_slice %arg7[%c1_i32_103] : memref<2x!tpu.dma_semaphore, #tpu.memory_space<semaphore_mem>> -> memref<1x!tpu.dma_semaphore, #tpu.memory_space<semaphore_mem>>
    %144 = tpu.memref_squeeze %143 : memref<1x!tpu.dma_semaphore, #tpu.memory_space<semaphore_mem>> -> memref<!tpu.dma_semaphore, #tpu.memory_space<semaphore_mem>>
    tpu.enqueue_dma source(%140 : memref<1x128xf32, #tpu.memory_space<any>>) target(%142 : memref<1x128xf32, #tpu.memory_space<vmem>>) target_semaphore(%144 : memref<!tpu.dma_semaphore, #tpu.memory_space<semaphore_mem>>)
    %c8_i32_107 = arith.constant 8 : i32
    %145 = arith.addi %3, %c8_i32_107 : i32
    %c7_i32_108 = arith.constant 7 : i32
    %146 = arith.addi %145, %c7_i32_108 : i32
    %147 = arith.index_cast %146 : i32 to index
    %148 = memref.load %arg2[%147] : memref<32xi32, #tpu.memory_space<smem>>
    %c1_i32_109 = arith.constant 1 : i32
    %c1_i32_110 = arith.constant 1 : i32
    %c0_i32_111 = arith.constant 0 : i32
    %149 = tpu.memref_slice %arg3[%148, %c0_i32_111] : memref<896x128xf32, #tpu.memory_space<any>> -> memref<1x128xf32, #tpu.memory_space<any>>
    %c7_i32_112 = arith.constant 7 : i32
    %c0_i32_113 = arith.constant 0 : i32
    %150 = tpu.memref_slice %arg6[%c1_i32_109, %c7_i32_112, %c0_i32_113] : memref<2x8x128xf32, #tpu.memory_space<vmem>> -> memref<1x1x128xf32, #tpu.memory_space<vmem>>
    %151 = tpu.memref_squeeze %150 : memref<1x1x128xf32, #tpu.memory_space<vmem>> -> memref<1x128xf32, #tpu.memory_space<vmem>>
    %152 = tpu.memref_slice %arg7[%c1_i32_110] : memref<2x!tpu.dma_semaphore, #tpu.memory_space<semaphore_mem>> -> memref<1x!tpu.dma_semaphore, #tpu.memory_space<semaphore_mem>>
    %153 = tpu.memref_squeeze %152 : memref<1x!tpu.dma_semaphore, #tpu.memory_space<semaphore_mem>> -> memref<!tpu.dma_semaphore, #tpu.memory_space<semaphore_mem>>
    tpu.enqueue_dma source(%149 : memref<1x128xf32, #tpu.memory_space<any>>) target(%151 : memref<1x128xf32, #tpu.memory_space<vmem>>) target_semaphore(%153 : memref<!tpu.dma_semaphore, #tpu.memory_space<semaphore_mem>>)
    %c0_114 = arith.constant 0 : index
    %c0_115 = arith.constant 0 : index
    %c0_116 = arith.constant 0 : index
    %154 = vector.load %arg6[%c0_114, %c0_115, %c0_116] : memref<2x8x128xf32, #tpu.memory_space<vmem>>, vector<1x8x128xf32>
    %155 = vector.shape_cast %154 : vector<1x8x128xf32> to vector<8x128xf32>
    %156 = vector.extract_strided_slice %76 {offsets = [0, 0, 0], sizes = [1, 1, 8], strides = [1, 1, 1]} : vector<1x2x8xf32> to vector<1x1x8xf32>
    %157 = vector.shape_cast %156 : vector<1x1x8xf32> to vector<1x8xf32>
    %cst = arith.constant dense<0.000000e+00> : vector<1x128xf32>
    %158 = tpu.matmul %157, %155, %cst {dimension_numbers = #tpu.dot_dimension_numbers<[1], [0], [0], [1], [0, 0, 1, 1], [], []>} : vector<1x8xf32>, vector<8x128xf32>, vector<1x128xf32> -> vector<1x128xf32>
    %cst_117 = arith.constant dense<0.000000e+00> : vector<1xf32>
    %159 = vector.multi_reduction <add>, %157, %cst_117 [1] : vector<1x8xf32> to vector<1xf32>
    %160 = vector.shape_cast %159 : vector<1xf32> to vector<1x1xf32>
    %cst_118 = arith.constant 9.99999971E-10 : f32
    %161 = vector.broadcast %cst_118 : f32 to vector<1x1xf32>
    %162 = arith.maximumf %160, %161 : vector<1x1xf32>
    %163 = tpu.reciprocal %162 {approx = true} : vector<1x1xf32> -> vector<1x1xf32>
    %164 = vector.broadcast %163 : vector<1x1xf32> to vector<1x128xf32>
    %165 = arith.mulf %158, %164 : vector<1x128xf32>
    %c0_119 = arith.constant 0 : index
    %c0_120 = arith.constant 0 : index
    %c0_121 = arith.constant 0 : index
    %166 = vector.load %arg5[%c0_119, %c0_120, %c0_121] : memref<1x2x128xf32, #tpu.memory_space<vmem>>, vector<1x1x128xf32>
    %167 = vector.shape_cast %166 : vector<1x1x128xf32> to vector<1x128xf32>
    %168 = vector.shape_cast %165 : vector<1x128xf32> to vector<1x1x128xf32>
    tpu.vector_store %arg5[%c0_119, %c0_120, %c0_121], %168 {strides = array<i32>} : memref<1x2x128xf32, #tpu.memory_space<vmem>>, vector<1x1x128xf32>,
    %c1_i32_122 = arith.constant 1 : i32
    %c1_i32_123 = arith.constant 1 : i32
    %c0_i32_124 = arith.constant 0 : i32
    %c0_i32_125 = arith.constant 0 : i32
    %169 = tpu.memref_slice %arg3[%c0_i32_124, %c0_i32_125] : memref<896x128xf32, #tpu.memory_space<any>> -> memref<8x128xf32, #tpu.memory_space<any>>
    %c0_i32_126 = arith.constant 0 : i32
    %c0_i32_127 = arith.constant 0 : i32
    %170 = tpu.memref_slice %arg6[%c1_i32_122, %c0_i32_126, %c0_i32_127] : memref<2x8x128xf32, #tpu.memory_space<vmem>> -> memref<1x8x128xf32, #tpu.memory_space<vmem>>
    %171 = tpu.memref_squeeze %170 : memref<1x8x128xf32, #tpu.memory_space<vmem>> -> memref<8x128xf32, #tpu.memory_space<vmem>>
    %172 = tpu.memref_slice %arg7[%c1_i32_123] : memref<2x!tpu.dma_semaphore, #tpu.memory_space<semaphore_mem>> -> memref<1x!tpu.dma_semaphore, #tpu.memory_space<semaphore_mem>>
    %173 = tpu.memref_squeeze %172 : memref<1x!tpu.dma_semaphore, #tpu.memory_space<semaphore_mem>> -> memref<!tpu.dma_semaphore, #tpu.memory_space<semaphore_mem>>
    tpu.wait_dma2 semaphore(%173 : memref<!tpu.dma_semaphore, #tpu.memory_space<semaphore_mem>>) src(%169 : memref<8x128xf32, #tpu.memory_space<any>>) dst(%171 : memref<8x128xf32, #tpu.memory_space<vmem>>)
    %c1 = arith.constant 1 : index
    %c0_128 = arith.constant 0 : index
    %c0_129 = arith.constant 0 : index
    %174 = vector.load %arg6[%c1, %c0_128, %c0_129] : memref<2x8x128xf32, #tpu.memory_space<vmem>>, vector<1x8x128xf32>
    %175 = vector.shape_cast %174 : vector<1x8x128xf32> to vector<8x128xf32>
    %176 = vector.extract_strided_slice %76 {offsets = [0, 1, 0], sizes = [1, 1, 8], strides = [1, 1, 1]} : vector<1x2x8xf32> to vector<1x1x8xf32>
    %177 = vector.shape_cast %176 : vector<1x1x8xf32> to vector<1x8xf32>
    %cst_130 = arith.constant dense<0.000000e+00> : vector<1x128xf32>
    %178 = tpu.matmul %177, %175, %cst_130 {dimension_numbers = #tpu.dot_dimension_numbers<[1], [0], [0], [1], [0, 0, 1, 1], [], []>} : vector<1x8xf32>, vector<8x128xf32>, vector<1x128xf32> -> vector<1x128xf32>
    %cst_131 = arith.constant dense<0.000000e+00> : vector<1xf32>
    %179 = vector.multi_reduction <add>, %177, %cst_131 [1] : vector<1x8xf32> to vector<1xf32>
    %180 = vector.shape_cast %179 : vector<1xf32> to vector<1x1xf32>
    %cst_132 = arith.constant 9.99999971E-10 : f32
    %181 = vector.broadcast %cst_132 : f32 to vector<1x1xf32>
    %182 = arith.maximumf %180, %181 : vector<1x1xf32>
    %183 = tpu.reciprocal %182 {approx = true} : vector<1x1xf32> -> vector<1x1xf32>
    %184 = vector.broadcast %183 : vector<1x1xf32> to vector<1x128xf32>
    %185 = arith.mulf %178, %184 : vector<1x128xf32>
    %c0_133 = arith.constant 0 : index
    %c1_134 = arith.constant 1 : index
    %c0_135 = arith.constant 0 : index
    %186 = vector.load %arg5[%c0_133, %c1_134, %c0_135] : memref<1x2x128xf32, #tpu.memory_space<vmem>>, vector<1x1x128xf32>
    %187 = vector.shape_cast %186 : vector<1x1x128xf32> to vector<1x128xf32>
    %188 = vector.shape_cast %185 : vector<1x128xf32> to vector<1x1x128xf32>
    tpu.vector_store %arg5[%c0_133, %c1_134, %c0_135], %188 {strides = array<i32>} : memref<1x2x128xf32, #tpu.memory_space<vmem>>, vector<1x1x128xf32>,
    return
  }
  func.func @transform_1(%arg0: i32, %arg1: i32, %arg2: memref<32xi32, #tpu.memory_space<smem>>) -> (i32, i32, i32) {
    %c0_i32 = arith.constant 0 : i32
    %c0_i32_0 = arith.constant 0 : i32
    return %arg0, %arg1, %c0_i32 : i32, i32, i32
  }
  func.func @transform_2(%arg0: i32, %arg1: i32, %arg2: memref<32xi32, #tpu.memory_space<smem>>) -> (i32, i32, i32) {
    %c0_i32 = arith.constant 0 : i32
    %c0_i32_0 = arith.constant 0 : i32
    return %arg0, %arg1, %c0_i32 : i32, i32, i32
  }
}

</mosaic_0001>

<bundles_post_ra>
// kernel: tpu_custom_call.1
= control target key start
LH: loop header
LB: loop body
LE: loop exit
PB: predicated region body
PF: predicated region fallthrough
CT: control target
= control target key end

     0   :  { %s1764_s0 = inlined_call_operand.hbm [shape: s32[32], index: 0, kind: input, shape index: {}]   ;;  %s1765_s1 = inlined_call_operand.hbm [shape: f32[896,128], index: 1, kind: input, shape index: {}]   ;;  %s1766_s2 = inlined_call_operand.vmem [shape: f32[2,2,8], index: 2, kind: input, shape index: {}]   ;;  %s1767_s3 = inlined_call_operand.hbm [shape: f32[2,2,128], index: 3, kind: output, shape index: {}]  }
   0x1   :  { %1771 = sst [smem:[#allocation49_spill]] %s1766_s2  ;;  %s833_s14 = scalar_lea.hbm %s1764_s0, 16 }
   0x2   :  { %p834_p0 = scmp.ne.s32.totalorder %s1764_s0, %s833_s14  ;;  %p837_p1 = scmp.lt.u32.totalorder %s833_s14, %s1764_s0 }
   0x4   :  { %p839_p2 = pnand %p837_p1, %p834_p0 }
   0x6   :  { %842 = shalt.err (!%p839_p2)  }
   0x7   :  { %s1313_s19 = smov [#allocation5]  }
   0x8   :  { %9 = dma.hbm_to_smem %s1764_s0, 16, %s1313_s19, [#allocation4] }
   0x9   :  { %1279 = dma.done.wait [#allocation4], 16 }
   0xa   :  { %1280 = vsyncadd [#allocation4], 4294967280 }
   0xb   :  { %11 = sfence }
   0xc   :  { %12 = vsyncpa [#allocation7], 0 }
   0xd   :  { %14 = vsyncpa [#allocation7 + $0x1], 0  ;;  %s1365_s22 = smov 0   ;;  %s1367_s23 = smov 0  }
   0xe   :  { %s1369_s24 = smov 0   ;;  %s1371_s25 = smov 0  }
   0xf   :  { %s1373_s26 = smov 0   ;;  %s1375_s27 = smov 0  }
  0x10 LB: > { %1772 = sst [smem:[#allocation46_spill]] %s1307_s26  ;;  %s707_s0 = sadd.s32 4294967295, %s1311_s27   ;;  %s1311_s27 = sphi %s1375_s27, %s20_s27   ;;  %s1307_s26 = sphi %s1373_s26, %s1781_s26   ;;  %s1303_s25 = sphi %s1371_s25, %s1780_s25   ;;  %s1299_s24 = sphi %s1369_s24, %s1784_s24   ;;  %s1295_s23 = sphi %s1367_s23, %s1783_s23   ;;  %s1291_s22 = sphi %s1365_s22, %s1782_s22  }
  0x11   : > { %s708_s28 = sadd.s32 4294967294, %s1311_s27   ;;  %s32_s29 = sadd.s32 1, %s1307_s26 }
  0x12   : > { %s69_s30 = sadd.s32 1, %s1299_s24  ;;  %p34_p3 = scmp.ge.s32.totalorder %s32_s29, 2 }
  0x13   : > { %p79_p4 = scmp.ne.s32.totalorder %s1299_s24, %s1295_s23  ;;  %p80_p5 = scmp.eq.s32.totalorder %s707_s0, 1 }
  0x14   : > { %p85_p6 = scmp.ne.s32.totalorder %s1295_s23, %s1291_s22  ;;  %s1786_s29 = smov (%p34_p3, %s32_s29), 0 }
  0x15   : > { %1773 = sst [smem:[#allocation47_spill]] %s1786_s29  ;;  %p1405_p7 = por %p80_p5, %p79_p4 }
  0x16   : > { %p86_p8 = scmp.eq.s32.totalorder %s708_s28, 1  ;;  %s64_s5 = ssub.s32 %s1307_s26, %s1786_s29 }
  0x17   : > { %p711_p9 = scmp.ge.s32.totalorder %s1311_s27, 1  ;;  %p67_p10 = scmp.eq.s32.totalorder %s64_s5, 0 }
  0x18   : > { %p1412_p11 = por %p86_p8, %p85_p6  ;;  %p114_p12 = scmp.lt.s32.totalorder %s1311_s27, 3 }
  0x19   : > { %s1418_s7 = scalar_select %p67_p10, %s1299_s24, %s69_s30  }
  0x1a   : > { %p115_p13 = pnand %p711_p9, %p114_p12 }
  0x1b   : > { %1776 = sst [smem:[#allocation48_spill]] %s1418_s7  ;;  %s1768_s8 = sand.u32 (!%p115_p13), 1, %s1295_s23  }
  0x1c   : > { %118 = sbr.rel (%p115_p13) target bundleno = 843 (0x34b), region = 24  ;;  %p136_p0 = scmp.lt.s32.totalorder (!%p115_p13), %s1303_s25, 1 }
  0x1d   : > { %s1424_s9 = sshll.u32 (!%p115_p13), %s1768_s8, 1  ;;  %s1427_s10 = sshll.u32 (!%p115_p13), %s1303_s25, 4 }
  0x1e   : > { %s147_s11 = sld [smem:[#allocation5 + %s1427_s10]] (!%p115_p13)  ;;  %s161_s13 = sadd.s32 (!%p115_p13), 1, %s1427_s10 }
  0x1f   : > { %s1314_s15 = smov (!%p115_p13), [#allocation2]   ;;  %s1777_s2 = sld [smem:[#allocation49_spill]] (!%p115_p13) }
  0x20   : > { %s157_s16 = sshll.u32 (!%p115_p13), %s1314_s15, 4  ;;  %s1437_s20 = sld [smem:[#allocation5 + %s161_s13]] (!%p115_p13)  ;;  %s1435_s16 = int_to_ptr.vmem [resolvable:$true] %s157_s16 }
  0x21   : > { %s1315_s0 = smov (!%p115_p13), [#allocation2 + $0x1]  }
  0x22   : > { %s173_s28 = sshll.u32 (!%p115_p13), %s1315_s0, 4  ;;  %s1444_s28 = int_to_ptr.vmem [resolvable:$true] %s173_s28 }
  0x23   : > { %s137_s12 = scalar_select %p136_p0, %s1303_s25, 1 }
  0x24   : > { %s716_s21 = sshll.u32 %s147_s11, 4 }
  0x25   : > { %s713_s14 = sshll.u32 %s137_s12, 1  ;;  %s149_s8 = scalar_lea.hbm %s1765_s1, %s716_s21 }
  0x26   : > { %s142_s19 = scalar_lea.vmem %s1777_s2, %s713_s14  ;;  %s843_s12 = scalar_lea.hbm %s149_s8, 16 }
  0x27   : > { %v1439_v0 = vld [vmem:[%s142_s19] sm:$0x3]  ;;  %p844_p1 = scmp.ne.s32.totalorder %s149_s8, %s843_s12  ;;  %s1449_s14 = scalar_lea.hbm %s1765_s1, 14336 }
  0x28   : > { %p846_p2 = scmp.lt.u32.totalorder %s149_s8, %s1765_s1  ;;  %p847_p3 = scmp.lt.u32.totalorder %s1449_s14, %s843_s12 }
  0x29   : > { %p849_p5 = scmp.lt.u32.totalorder %s843_s12, %s149_s8 }
  0x2a   : > { %p848_p4 = por %p847_p3, %p846_p2 }
  0x2c   : > { %p850_p6 = por %p849_p5, %p848_p4 }
  0x2e   : > { %p851_p8 = pnand %p850_p6, %p844_p1 }
  0x30   : > { %854 = shalt.err (!%p851_p8)  }
  0x31   : > { %s855_s11 = scalar_lea.vmem %s1435_s16, 16  ;;  %s1458_s19 = scalar_lea.vmem %s1435_s16, 256 }
  0x32   : > { %p856_p9 = scmp.ne.s32.totalorder %s1435_s16, %s855_s11  ;;  %p860_p10 = scmp.lt.s32.totalorder %s1435_s16, %s1435_s16 }
  0x33   : > { %p861_p12 = scmp.lt.s32.totalorder %s1458_s19, %s855_s11 }
  0x35   : > { %p862_p13 = por %p861_p12, %p860_p10 }
  0x37   : > { %p863_p0 = pnand %p862_p13, %p856_p9 }
  0x39   : > { %866 = shalt.err (!%p863_p0)  }
  0x3a   : > { %160 = dma.hbm_to_vmem [thread:$0]  %s149_s8, 16, %s1435_s16, [#allocation3] }
  0x3b   : > { %s177_s21 = sadd.s32 2, %s1427_s10  ;;  %s1316_s30 = smov [#allocation2 + $0x2]  }
  0x3c   : > { %s1465_s0 = sld [smem:[#allocation5 + %s177_s21]]  ;;  %s189_s5 = sshll.u32 %s1316_s30, 4  ;;  %s1468_s5 = int_to_ptr.vmem [resolvable:$true] %s189_s5 }
  0x3d   : > { %s717_s12 = sshll.u32 %s1437_s20, 4  ;;  %s193_s18 = sadd.s32 3, %s1427_s10 }
  0x3e   : > { %s164_s13 = scalar_lea.hbm %s1765_s1, %s717_s12 }
  0x3f   : > { %s867_s11 = scalar_lea.hbm %s164_s13, 16  ;;  %p870_p2 = scmp.lt.u32.totalorder %s164_s13, %s1765_s1 }
  0x40   : > { %p868_p1 = scmp.ne.s32.totalorder %s164_s13, %s867_s11  ;;  %p871_p3 = scmp.lt.u32.totalorder %s1449_s14, %s867_s11 }
  0x41   : > { %p873_p5 = scmp.lt.u32.totalorder %s867_s11, %s164_s13 }
  0x42   : > { %p872_p4 = por %p871_p3, %p870_p2 }
  0x44   : > { %p874_p6 = por %p873_p5, %p872_p4 }
  0x46   : > { %p875_p8 = pnand %p874_p6, %p868_p1 }
  0x48   : > { %878 = shalt.err (!%p875_p8)  }
  0x49   : > { %s879_s8 = scalar_lea.vmem %s1444_s28, 16  ;;  %p884_p10 = scmp.lt.s32.totalorder %s1444_s28, %s1435_s16 }
  0x4a   : > { %p880_p9 = scmp.ne.s32.totalorder %s1444_s28, %s879_s8  ;;  %p885_p12 = scmp.lt.s32.totalorder %s1458_s19, %s879_s8 }
  0x4c   : > { %p886_p13 = por %p885_p12, %p884_p10 }
  0x4e   : > { %p887_p0 = pnand %p886_p13, %p880_p9 }
  0x50   : > { %890 = shalt.err (!%p887_p0)  }
  0x51   : > { %176 = dma.hbm_to_vmem [thread:$0]  %s164_s13, 16, %s1444_s28, [#allocation3] }
  0x52   : > { %s1484_s2 = sld [smem:[#allocation5 + %s193_s18]]  ;;  %s1317_s29 = smov [#allocation2 + $0x3]  }
  0x53   : > { %s205_s20 = sshll.u32 %s1317_s29, 4  ;;  %s209_s21 = sadd.s32 4, %s1427_s10  ;;  %s1488_s20 = int_to_ptr.vmem [resolvable:$true] %s205_s20 }
  0x54   : > { %s718_s30 = sshll.u32 %s1465_s0, 4  ;;  %s1493_s11 = sld [smem:[#allocation5 + %s209_s21]] }
  0x55   : > { %s180_s17 = scalar_lea.hbm %s1765_s1, %s718_s30 }
  0x56   : > { %s891_s8 = scalar_lea.hbm %s180_s17, 16  ;;  %p894_p2 = scmp.lt.u32.totalorder %s180_s17, %s1765_s1 }
  0x57   : > { %p892_p1 = scmp.ne.s32.totalorder %s180_s17, %s891_s8  ;;  %p895_p3 = scmp.lt.u32.totalorder %s1449_s14, %s891_s8 }
  0x58   : > { %p897_p5 = scmp.lt.u32.totalorder %s891_s8, %s180_s17 }
  0x59   : > { %p896_p4 = por %p895_p3, %p894_p2 }
  0x5b   : > { %p898_p6 = por %p897_p5, %p896_p4 }
  0x5d   : > { %p899_p8 = pnand %p898_p6, %p892_p1 }
  0x5f   : > { %902 = shalt.err (!%p899_p8)  }
  0x60   : > { %s903_s28 = scalar_lea.vmem %s1468_s5, 16  ;;  %p908_p10 = scmp.lt.s32.totalorder %s1468_s5, %s1435_s16 }
  0x61   : > { %p904_p9 = scmp.ne.s32.totalorder %s1468_s5, %s903_s28  ;;  %p909_p12 = scmp.lt.s32.totalorder %s1458_s19, %s903_s28 }
  0x63   : > { %p910_p13 = por %p909_p12, %p908_p10 }
  0x65   : > { %p911_p0 = pnand %p910_p13, %p904_p9 }
  0x67   : > { %914 = shalt.err (!%p911_p0)  }
  0x68   : > { %192 = dma.hbm_to_vmem [thread:$0]  %s180_s17, 16, %s1468_s5, [#allocation3] }
  0x69   : > { %s225_s26 = sadd.s32 5, %s1427_s10  ;;  %s719_s7 = sshll.u32 %s1484_s2, 4 }
  0x6a   : > { %s1318_s0 = smov [#allocation2 + $0x4]   ;;  %s196_s21 = scalar_lea.hbm %s1765_s1, %s719_s7 }
  0x6b   : > { %s221_s13 = sshll.u32 %s1318_s0, 4  ;;  %s915_s30 = scalar_lea.hbm %s196_s21, 16  ;;  %s1510_s13 = int_to_ptr.vmem [resolvable:$true] %s221_s13 }
  0x6c   : > { %p916_p1 = scmp.ne.s32.totalorder %s196_s21, %s915_s30  ;;  %p918_p2 = scmp.lt.u32.totalorder %s196_s21, %s1765_s1 }
  0x6d   : > { %p919_p3 = scmp.lt.u32.totalorder %s1449_s14, %s915_s30  ;;  %p921_p5 = scmp.lt.u32.totalorder %s915_s30, %s196_s21 }
  0x6f   : > { %p920_p4 = por %p919_p3, %p918_p2 }
  0x71   : > { %p922_p6 = por %p921_p5, %p920_p4 }
  0x73   : > { %p923_p8 = pnand %p922_p6, %p916_p1 }
  0x75   : > { %926 = shalt.err (!%p923_p8)  }
  0x76   : > { %s927_s5 = scalar_lea.vmem %s1488_s20, 16  ;;  %p932_p10 = scmp.lt.s32.totalorder %s1488_s20, %s1435_s16 }
  0x77   : > { %p928_p9 = scmp.ne.s32.totalorder %s1488_s20, %s927_s5  ;;  %p933_p12 = scmp.lt.s32.totalorder %s1458_s19, %s927_s5 }
  0x79   : > { %p934_p13 = por %p933_p12, %p932_p10 }
  0x7b   : > { %p935_p0 = pnand %p934_p13, %p928_p9 }
  0x7d   : > { %938 = shalt.err (!%p935_p0)  }
  0x7e   : > { %208 = dma.hbm_to_vmem [thread:$0]  %s196_s21, 16, %s1488_s20, [#allocation3] }
  0x7f   : > { %s720_s2 = sshll.u32 %s1493_s11, 4  ;;  %s1523_s17 = sld [smem:[#allocation5 + %s225_s26]] }
  0x80   : > { %s212_s7 = scalar_lea.hbm %s1765_s1, %s720_s2 }
  0x81   : > { %s939_s0 = scalar_lea.hbm %s212_s7, 16  ;;  %p942_p2 = scmp.lt.u32.totalorder %s212_s7, %s1765_s1 }
  0x82   : > { %p940_p1 = scmp.ne.s32.totalorder %s212_s7, %s939_s0  ;;  %p943_p3 = scmp.lt.u32.totalorder %s1449_s14, %s939_s0 }
  0x83   : > { %p945_p5 = scmp.lt.u32.totalorder %s939_s0, %s212_s7 }
  0x84   : > { %p944_p4 = por %p943_p3, %p942_p2 }
  0x86   : > { %p946_p6 = por %p945_p5, %p944_p4 }
  0x88   : > { %p947_p8 = pnand %p946_p6, %p940_p1 }
  0x8a   : > { %950 = shalt.err (!%p947_p8)  }
  0x8b   : > { %s951_s20 = scalar_lea.vmem %s1510_s13, 16  ;;  %p956_p10 = scmp.lt.s32.totalorder %s1510_s13, %s1435_s16 }
  0x8c   : > { %p952_p9 = scmp.ne.s32.totalorder %s1510_s13, %s951_s20  ;;  %p957_p12 = scmp.lt.s32.totalorder %s1458_s19, %s951_s20 }
  0x8e   : > { %p958_p13 = por %p957_p12, %p956_p10 }
  0x90   : > { %p959_p0 = pnand %p958_p13, %p952_p9 }
  0x92   : > { %962 = shalt.err (!%p959_p0)  }
  0x93   : > { %224 = dma.hbm_to_vmem [thread:$0]  %s212_s7, 16, %s1510_s13, [#allocation3] }
  0x94   : > { %s1319_s11 = smov [#allocation2 + $0x5]   ;;  %s241_s21 = sadd.s32 6, %s1427_s10 }
  0x95   : > { %s237_s26 = sshll.u32 %s1319_s11, 4  ;;  %s242_s30 = sld [smem:[#allocation5 + %s241_s21]]  ;;  %s238_s26 = int_to_ptr.vmem [resolvable:$true] %s237_s26 }
  0x96   : > { %s257_s12 = sadd.s32 7, %s1427_s10  ;;  %s721_s15 = sshll.u32 %s1523_s17, 4 }
  0x97   : > { %s1320_s5 = smov [#allocation2 + $0x6]   ;;  %s228_s0 = scalar_lea.hbm %s1765_s1, %s721_s15 }
  0x98   : > { %s253_s2 = sshll.u32 %s1320_s5, 4  ;;  %s963_s18 = scalar_lea.hbm %s228_s0, 16  ;;  %s1544_s2 = int_to_ptr.vmem [resolvable:$true] %s253_s2 }
  0x99   : > { %p964_p1 = scmp.ne.s32.totalorder %s228_s0, %s963_s18  ;;  %p966_p2 = scmp.lt.u32.totalorder %s228_s0, %s1765_s1 }
  0x9a   : > { %p967_p3 = scmp.lt.u32.totalorder %s1449_s14, %s963_s18  ;;  %p969_p5 = scmp.lt.u32.totalorder %s963_s18, %s228_s0 }
  0x9c   : > { %p968_p4 = por %p967_p3, %p966_p2 }
  0x9e   : > { %p970_p6 = por %p969_p5, %p968_p4 }
  0xa0   : > { %p971_p8 = pnand %p970_p6, %p964_p1 }
  0xa2   : > { %974 = shalt.err (!%p971_p8)  }
  0xa3   : > { %s975_s13 = scalar_lea.vmem %s238_s26, 16  ;;  %p980_p10 = scmp.lt.s32.totalorder %s238_s26, %s1435_s16 }
  0xa4   : > { %p976_p9 = scmp.ne.s32.totalorder %s238_s26, %s975_s13  ;;  %p981_p12 = scmp.lt.s32.totalorder %s1458_s19, %s975_s13 }
  0xa6   : > { %p982_p13 = por %p981_p12, %p980_p10 }
  0xa8   : > { %p983_p0 = pnand %p982_p13, %p976_p9 }
  0xaa   : > { %986 = shalt.err (!%p983_p0)  }
  0xab   : > { %240 = dma.hbm_to_vmem [thread:$0]  %s228_s0, 16, %s238_s26, [#allocation3] }
  0xac   : > { %s258_s17 = sld [smem:[#allocation5 + %s257_s12]]  ;;  %s722_s7 = sshll.u32 %s242_s30, 4 }
  0xad   : > { %s244_s15 = scalar_lea.hbm %s1765_s1, %s722_s7  ;;  %s1321_s5 = smov [#allocation2 + $0x7]  }
  0xae   : > { %s269_s8 = sshll.u32 %s1321_s5, 4  ;;  %s987_s28 = scalar_lea.hbm %s244_s15, 16  ;;  %s270_s8 = int_to_ptr.vmem [resolvable:$true] %s269_s8 }
  0xaf   : > { %p988_p1 = scmp.ne.s32.totalorder %s244_s15, %s987_s28  ;;  %p990_p2 = scmp.lt.u32.totalorder %s244_s15, %s1765_s1 }
  0xb0   : > { %p991_p3 = scmp.lt.u32.totalorder %s1449_s14, %s987_s28  ;;  %p993_p5 = scmp.lt.u32.totalorder %s987_s28, %s244_s15 }
  0xb2   : > { %p992_p4 = por %p991_p3, %p990_p2 }
  0xb4   : > { %p994_p6 = por %p993_p5, %p992_p4 }
  0xb6   : > { %p995_p8 = pnand %p994_p6, %p988_p1 }
  0xb8   : > { %998 = shalt.err (!%p995_p8)  }
  0xb9   : > { %s999_s26 = scalar_lea.vmem %s1544_s2, 16  ;;  %p1004_p10 = scmp.lt.s32.totalorder %s1544_s2, %s1435_s16 }
  0xba   : > { %p1000_p9 = scmp.ne.s32.totalorder %s1544_s2, %s999_s26  ;;  %p1005_p12 = scmp.lt.s32.totalorder %s1458_s19, %s999_s26 }
  0xbc   : > { %p1006_p13 = por %p1005_p12, %p1004_p10 }
  0xbe   : > { %p1007_p0 = pnand %p1006_p13, %p1000_p9 }
  0xc0   : > { %1010 = shalt.err (!%p1007_p0)  }
  0xc1   : > { %256 = dma.hbm_to_vmem [thread:$0]  %s244_s15, 16, %s1544_s2, [#allocation3] }
  0xc2   : > { %s723_s30 = sshll.u32 %s258_s17, 4 }
  0xc3   : > { %s260_s20 = scalar_lea.hbm %s1765_s1, %s723_s30 }
  0xc4   : > { %s1011_s13 = scalar_lea.hbm %s260_s20, 16  ;;  %p1014_p2 = scmp.lt.u32.totalorder %s260_s20, %s1765_s1 }
  0xc5   : > { %p1012_p1 = scmp.ne.s32.totalorder %s260_s20, %s1011_s13  ;;  %p1015_p3 = scmp.lt.u32.totalorder %s1449_s14, %s1011_s13 }
  0xc6   : > { %p1017_p5 = scmp.lt.u32.totalorder %s1011_s13, %s260_s20 }
  0xc7   : > { %p1016_p4 = por %p1015_p3, %p1014_p2 }
  0xc9   : > { %p1018_p6 = por %p1017_p5, %p1016_p4 }
  0xcb   : > { %p1019_p8 = pnand %p1018_p6, %p1012_p1 }
  0xcd   : > { %1022 = shalt.err (!%p1019_p8)  }
  0xce   : > { %s1023_s21 = scalar_lea.vmem %s270_s8, 16  ;;  %p1028_p10 = scmp.lt.s32.totalorder %s270_s8, %s1435_s16 }
  0xcf   : > { %p1024_p9 = scmp.ne.s32.totalorder %s270_s8, %s1023_s21  ;;  %p1029_p12 = scmp.lt.s32.totalorder %s1458_s19, %s1023_s21 }
  0xd1   : > { %p1030_p13 = por %p1029_p12, %p1028_p10 }
  0xd3   : > { %p1031_p0 = pnand %p1030_p13, %p1024_p9 }
  0xd5   : > { %1034 = shalt.err (!%p1031_p0)  }
  0xd6   : > { %272 = dma.hbm_to_vmem [thread:$0]  %s260_s20, 16, %s270_s8, [#allocation3] }
  0xd7   : > { %s1575_s2 = scalar_lea.vmem [#allocation6], %s1424_s9 }
  0xd8   : > { %1281 = dma.done.wait [#allocation3], 128 }
  0xd9   : > { %1282 = vsyncadd [#allocation3], 4294967168  ;;  %s277_s17 = sadd.s32 8, %s1427_s10  ;;  %s1322_s5 = smov [#allocation2 + $0x8]   ;;  %v1323_v1 = vmov 0.0   ;;  %vm1324_vm0 = vmmov 0  }
  0xda   : > { %s278_s15 = sld [smem:[#allocation5 + %s277_s17]]  ;;  %s290_s28 = sshll.u32 %s1322_s5, 4  ;;  %745 = vmatprep.subr.mxu0 %v1323_v1  ;;  %747 = vmatprep.mubr.msk.f32.mxu0 %vm1324_vm0, %v1323_v1  ;;  %vm481_vm1 = vcmask 57344   ;;  %s1581_s28 = int_to_ptr.vmem [resolvable:$true] %s290_s28 }
  0xdb   : > { %s294_s9 = sadd.s32 9, %s1427_s10  ;;  %v482_v2 = vsel %vm481_vm1, %v1439_v0, 0.0  ;;  %s1325_s18 = smov [#allocation2 + $0x9]  }
  0xdc   : > { %s1585_s8 = sld [smem:[#allocation5 + %s294_s9]]  ;;  %483 = vadd.xlane.f32.xlu0 %v482_v2  ;;  %s306_s29 = sshll.u32 %s1325_s18, 4  ;;  %s1588_s29 = int_to_ptr.vmem [resolvable:$true] %s306_s29 }
  0xdd   : > { %s310_s26 = sadd.s32 10, %s1427_s10  ;;  %s326_s12 = sadd.s32 11, %s1427_s10 }
  0xde   : > { %s1590_s30 = sld [smem:[#allocation5 + %s310_s26]]  ;;  %s1326_s20 = smov [#allocation2 + $0xa]  }
  0xdf   : > { %s322_s13 = sshll.u32 %s1326_s20, 4  ;;  %s1596_s13 = int_to_ptr.vmem [resolvable:$true] %s322_s13 }
  0xe0   : > { %s724_s0 = sshll.u32 %s278_s15, 4 }
  0xe1   : > { %s280_s21 = scalar_lea.hbm %s1765_s1, %s724_s0 }
  0xe2   : > { %s1035_s17 = scalar_lea.hbm %s280_s21, 16  ;;  %p1038_p2 = scmp.lt.u32.totalorder %s280_s21, %s1765_s1 }
  0xe3   : > { %p1036_p1 = scmp.ne.s32.totalorder %s280_s21, %s1035_s17  ;;  %p1039_p3 = scmp.lt.u32.totalorder %s1449_s14, %s1035_s17 }
  0xe4   : > { %p1041_p5 = scmp.lt.u32.totalorder %s1035_s17, %s280_s21 }
  0xe5   : > { %p1040_p4 = por %p1039_p3, %p1038_p2 }
  0xe7   : > { %p1042_p6 = por %p1041_p5, %p1040_p4 }
  0xe9   : > { %p1043_p8 = pnand %p1042_p6, %p1036_p1 }
  0xeb   : > { %1046 = shalt.err (!%p1043_p8)  }
  0xec   : > { %s1047_s15 = scalar_lea.vmem %s1581_s28, 16  ;;  %p1052_p10 = scmp.lt.s32.totalorder %s1581_s28, %s1435_s16 }
  0xed   : > { %p1048_p9 = scmp.ne.s32.totalorder %s1581_s28, %s1047_s15  ;;  %p1053_p12 = scmp.lt.s32.totalorder %s1458_s19, %s1047_s15 }
  0xef   : > { %p1054_p13 = por %p1053_p12, %p1052_p10 }
  0xf1   : > { %p1055_p0 = pnand %p1054_p13, %p1048_p9 }
  0xf3   : > { %1058 = shalt.err (!%p1055_p0)  }
  0xf4   : > { %293 = dma.hbm_to_vmem [thread:$0]  %s280_s21, 16, %s1581_s28, [#allocation3 + $0x1] }
  0xf5   : > { %s725_s18 = sshll.u32 %s1585_s8, 4  ;;  %s1609_s26 = sld [smem:[#allocation5 + %s326_s12]] }
  0xf6   : > { %s297_s7 = scalar_lea.hbm %s1765_s1, %s725_s18  ;;  %s726_s11 = sshll.u32 %s1590_s30, 4 }
  0xf7   : > { %s1059_s17 = scalar_lea.hbm %s297_s7, 16  ;;  %p1062_p2 = scmp.lt.u32.totalorder %s297_s7, %s1765_s1 }
  0xf8   : > { %p1060_p1 = scmp.ne.s32.totalorder %s297_s7, %s1059_s17  ;;  %p1063_p3 = scmp.lt.u32.totalorder %s1449_s14, %s1059_s17 }
  0xf9   : > { %p1065_p5 = scmp.lt.u32.totalorder %s1059_s17, %s297_s7 }
  0xfa   : > { %p1064_p4 = por %p1063_p3, %p1062_p2 }
  0xfc   : > { %p1066_p6 = por %p1065_p5, %p1064_p4 }
  0xfe   : > { %p1067_p8 = pnand %p1066_p6, %p1060_p1 }
 0x100   : > { %1070 = shalt.err (!%p1067_p8)  }
 0x101   : > { %s1071_s28 = scalar_lea.vmem %s1588_s29, 16  ;;  %p1076_p10 = scmp.lt.s32.totalorder %s1588_s29, %s1435_s16 }
 0x102   : > { %p1072_p9 = scmp.ne.s32.totalorder %s1588_s29, %s1071_s28  ;;  %p1077_p12 = scmp.lt.s32.totalorder %s1458_s19, %s1071_s28 }
 0x104   : > { %p1078_p13 = por %p1077_p12, %p1076_p10 }
 0x106   : > { %p1079_p0 = pnand %p1078_p13, %p1072_p9 }
 0x108   : > { %1082 = shalt.err (!%p1079_p0)  }
 0x109   : > { %309 = dma.hbm_to_vmem [thread:$0]  %s297_s7, 16, %s1588_s29, [#allocation3 + $0x1] }
 0x10a   : > { %s313_s12 = scalar_lea.hbm %s1765_s1, %s726_s11 }
 0x10b   : > { %s1083_s21 = scalar_lea.hbm %s313_s12, 16  ;;  %p1086_p2 = scmp.lt.u32.totalorder %s313_s12, %s1765_s1 }
 0x10c   : > { %p1084_p1 = scmp.ne.s32.totalorder %s313_s12, %s1083_s21  ;;  %p1087_p3 = scmp.lt.u32.totalorder %s1449_s14, %s1083_s21 }
 0x10d   : > { %p1089_p5 = scmp.lt.u32.totalorder %s1083_s21, %s313_s12 }
 0x10e   : > { %p1088_p4 = por %p1087_p3, %p1086_p2 }
 0x110   : > { %p1090_p6 = por %p1089_p5, %p1088_p4 }
 0x112   : > { %p1091_p8 = pnand %p1090_p6, %p1084_p1 }
 0x114   : > { %1094 = shalt.err (!%p1091_p8)  }
 0x115   : > { %s1095_s29 = scalar_lea.vmem %s1596_s13, 16  ;;  %p1100_p10 = scmp.lt.s32.totalorder %s1596_s13, %s1435_s16 }
 0x116   : > { %p1096_p9 = scmp.ne.s32.totalorder %s1596_s13, %s1095_s29  ;;  %p1101_p12 = scmp.lt.s32.totalorder %s1458_s19, %s1095_s29 }
 0x118   : > { %p1102_p13 = por %p1101_p12, %p1100_p10 }
 0x11a   : > { %p1103_p0 = pnand %p1102_p13, %p1096_p9 }
 0x11c   : > { %1106 = shalt.err (!%p1103_p0)  }
 0x11d   : > { %325 = dma.hbm_to_vmem [thread:$0]  %s313_s12, 16, %s1596_s13, [#allocation3 + $0x1] }
 0x11e   : > { %s1327_s0 = smov [#allocation2 + $0xb]   ;;  %s342_s7 = sadd.s32 12, %s1427_s10 }
 0x11f   : > { %s338_s20 = sshll.u32 %s1327_s0, 4  ;;  %s727_s11 = sshll.u32 %s1609_s26, 4  ;;  %s339_s20 = int_to_ptr.vmem [resolvable:$true] %s338_s20 }
 0x120   : > { %s329_s9 = scalar_lea.hbm %s1765_s1, %s727_s11  ;;  %s1643_s28 = sld [smem:[#allocation5 + %s342_s7]] }
 0x121   : > { %s1107_s8 = scalar_lea.hbm %s329_s9, 16  ;;  %p1110_p2 = scmp.lt.u32.totalorder %s329_s9, %s1765_s1 }
 0x122   : > { %p1108_p1 = scmp.ne.s32.totalorder %s329_s9, %s1107_s8  ;;  %p1111_p3 = scmp.lt.u32.totalorder %s1449_s14, %s1107_s8 }
 0x123   : > { %p1113_p5 = scmp.lt.u32.totalorder %s1107_s8, %s329_s9 }
 0x124   : > { %p1112_p4 = por %p1111_p3, %p1110_p2 }
 0x126   : > { %p1114_p6 = por %p1113_p5, %p1112_p4 }
 0x128   : > { %p1115_p8 = pnand %p1114_p6, %p1108_p1 }
 0x12a   : > { %1118 = shalt.err (!%p1115_p8)  }
 0x12b   : > { %s1119_s13 = scalar_lea.vmem %s339_s20, 16  ;;  %p1124_p10 = scmp.lt.s32.totalorder %s339_s20, %s1435_s16 }
 0x12c   : > { %p1120_p9 = scmp.ne.s32.totalorder %s339_s20, %s1119_s13  ;;  %p1125_p12 = scmp.lt.s32.totalorder %s1458_s19, %s1119_s13 }
 0x12e   : > { %p1126_p13 = por %p1125_p12, %p1124_p10 }
 0x130   : > { %p1127_p0 = pnand %p1126_p13, %p1120_p9 }
 0x132   : > { %1130 = shalt.err (!%p1127_p0)  }
 0x133   : > { %341 = dma.hbm_to_vmem [thread:$0]  %s329_s9, 16, %s339_s20, [#allocation3 + $0x1] }
 0x134   : > { %s358_s26 = sadd.s32 13, %s1427_s10  ;;  %s1328_s12 = smov [#allocation2 + $0xc]  }
 0x135   : > { %s354_s15 = sshll.u32 %s1328_s12, 4  ;;  %s359_s18 = sld [smem:[#allocation5 + %s358_s26]]  ;;  %s355_s15 = int_to_ptr.vmem [resolvable:$true] %s354_s15 }
 0x136   : > { %s1329_s29 = smov [#allocation2 + $0xd]   ;;  %s374_s7 = sadd.s32 14, %s1427_s10 }
 0x137   : > { %s370_s0 = sshll.u32 %s1329_s29, 4  ;;  %s728_s11 = sshll.u32 %s1643_s28, 4  ;;  %s1654_s0 = int_to_ptr.vmem [resolvable:$true] %s370_s0 }
 0x138   : > { %s345_s8 = scalar_lea.hbm %s1765_s1, %s728_s11  ;;  %s1659_s20 = sld [smem:[#allocation5 + %s374_s7]] }
 0x139   : > { %s1131_s9 = scalar_lea.hbm %s345_s8, 16  ;;  %p1134_p2 = scmp.lt.u32.totalorder %s345_s8, %s1765_s1 }
 0x13a   : > { %p1132_p1 = scmp.ne.s32.totalorder %s345_s8, %s1131_s9  ;;  %p1135_p3 = scmp.lt.u32.totalorder %s1449_s14, %s1131_s9 }
 0x13b   : > { %p1137_p5 = scmp.lt.u32.totalorder %s1131_s9, %s345_s8 }
 0x13c   : > { %p1136_p4 = por %p1135_p3, %p1134_p2 }
 0x13e   : > { %p1138_p6 = por %p1137_p5, %p1136_p4 }
 0x140   : > { %p1139_p8 = pnand %p1138_p6, %p1132_p1 }
 0x142   : > { %1142 = shalt.err (!%p1139_p8)  }
 0x143   : > { %s1143_s28 = scalar_lea.vmem %s355_s15, 16  ;;  %p1148_p10 = scmp.lt.s32.totalorder %s355_s15, %s1435_s16 }
 0x144   : > { %p1144_p9 = scmp.ne.s32.totalorder %s355_s15, %s1143_s28  ;;  %p1149_p12 = scmp.lt.s32.totalorder %s1458_s19, %s1143_s28 }
 0x146   : > { %p1150_p13 = por %p1149_p12, %p1148_p10 }
 0x148   : > { %p1151_p0 = pnand %p1150_p13, %p1144_p9 }
 0x14a   : > { %1154 = shalt.err (!%p1151_p0)  }
 0x14b   : > { %357 = dma.hbm_to_vmem [thread:$0]  %s345_s8, 16, %s355_s15, [#allocation3 + $0x1] }
 0x14c   : > { %s729_s13 = sshll.u32 %s359_s18, 4  ;;  %s1330_s7 = smov [#allocation2 + $0xe]  }
 0x14d   : > { %s361_s29 = scalar_lea.hbm %s1765_s1, %s729_s13  ;;  %s386_s11 = sshll.u32 %s1330_s7, 4  ;;  %s387_s11 = int_to_ptr.vmem [resolvable:$true] %s386_s11 }
 0x14e   : > { %s1155_s17 = scalar_lea.hbm %s361_s29, 16  ;;  %p1158_p2 = scmp.lt.u32.totalorder %s361_s29, %s1765_s1 }
 0x14f   : > { %p1156_p1 = scmp.ne.s32.totalorder %s361_s29, %s1155_s17  ;;  %p1159_p3 = scmp.lt.u32.totalorder %s1449_s14, %s1155_s17 }
 0x150   : > { %p1161_p5 = scmp.lt.u32.totalorder %s1155_s17, %s361_s29 }
 0x151   : > { %p1160_p4 = por %p1159_p3, %p1158_p2 }
 0x153   : > { %p1162_p6 = por %p1161_p5, %p1160_p4 }
 0x155   : > { %p1163_p8 = pnand %p1162_p6, %p1156_p1 }
 0x157   : > { %1166 = shalt.err (!%p1163_p8)  }
 0x158   : > { %s1167_s15 = scalar_lea.vmem %s1654_s0, 16  ;;  %p1172_p10 = scmp.lt.s32.totalorder %s1654_s0, %s1435_s16 }
 0x159   : > { %p1168_p9 = scmp.ne.s32.totalorder %s1654_s0, %s1167_s15  ;;  %p1173_p12 = scmp.lt.s32.totalorder %s1458_s19, %s1167_s15 }
 0x15b   : > { %p1174_p13 = por %p1173_p12, %p1172_p10 }
 0x15d   : > { %p1175_p0 = pnand %p1174_p13, %p1168_p9 }
 0x15f   : > { %1178 = shalt.err (!%p1175_p0)  }
 0x160   : > { %373 = dma.hbm_to_vmem [thread:$0]  %s361_s29, 16, %s1654_s0, [#allocation3 + $0x1] }
 0x161   : > { %s390_s18 = sadd.s32 15, %s1427_s10  ;;  %s730_s8 = sshll.u32 %s1659_s20, 4 }
 0x162   : > { %s391_s30 = sld [smem:[#allocation5 + %s390_s18]]  ;;  %s377_s13 = scalar_lea.hbm %s1765_s1, %s730_s8 }
 0x163   : > { %s1179_s26 = scalar_lea.hbm %s377_s13, 16  ;;  %p1182_p2 = scmp.lt.u32.totalorder %s377_s13, %s1765_s1 }
 0x164   : > { %p1180_p1 = scmp.ne.s32.totalorder %s377_s13, %s1179_s26  ;;  %p1183_p3 = scmp.lt.u32.totalorder %s1449_s14, %s1179_s26 }
 0x165   : > { %p1185_p5 = scmp.lt.u32.totalorder %s1179_s26, %s377_s13 }
 0x166   : > { %p1184_p4 = por %p1183_p3, %p1182_p2 }
 0x168   : > { %p1186_p6 = por %p1185_p5, %p1184_p4 }
 0x16a   : > { %p1187_p8 = pnand %p1186_p6, %p1180_p1 }
 0x16c   : > { %1190 = shalt.err (!%p1187_p8)  }
 0x16d   : > { %s1191_s0 = scalar_lea.vmem %s387_s11, 16  ;;  %p1196_p10 = scmp.lt.s32.totalorder %s387_s11, %s1435_s16 }
 0x16e   : > { %p1192_p9 = scmp.ne.s32.totalorder %s387_s11, %s1191_s0  ;;  %p1197_p12 = scmp.lt.s32.totalorder %s1458_s19, %s1191_s0 }
 0x170   : > { %p1198_p13 = por %p1197_p12, %p1196_p10 }
 0x172   : > { %p1199_p0 = pnand %p1198_p13, %p1192_p9 }
 0x174   : > { %1202 = shalt.err (!%p1199_p0)  }
 0x175   : > { %389 = dma.hbm_to_vmem [thread:$0]  %s377_s13, 16, %s387_s11, [#allocation3 + $0x1] }
 0x176   : > { %s1331_s10 = smov [#allocation2 + $0xf]   ;;  %s731_s29 = sshll.u32 %s391_s30, 4 }
 0x177   : > { %s402_s20 = sshll.u32 %s1331_s10, 4  ;;  %s393_s9 = scalar_lea.hbm %s1765_s1, %s731_s29  ;;  %s403_s20 = int_to_ptr.vmem [resolvable:$true] %s402_s20 }
 0x178   : > { %s1203_s15 = scalar_lea.hbm %s393_s9, 16  ;;  %p1206_p2 = scmp.lt.u32.totalorder %s393_s9, %s1765_s1 }
 0x179   : > { %p1204_p1 = scmp.ne.s32.totalorder %s393_s9, %s1203_s15  ;;  %p1207_p3 = scmp.lt.u32.totalorder %s1449_s14, %s1203_s15 }
 0x17a   : > { %p1209_p5 = scmp.lt.u32.totalorder %s1203_s15, %s393_s9 }
 0x17b   : > { %p1208_p4 = por %p1207_p3, %p1206_p2 }
 0x17d   : > { %p1210_p6 = por %p1209_p5, %p1208_p4 }
 0x17f   : > { %p1211_p8 = pnand %p1210_p6, %p1204_p1 }
 0x181   : > { %1214 = shalt.err (!%p1211_p8)  }
 0x182   : > { %s1215_s11 = scalar_lea.vmem %s403_s20, 16  ;;  %p1220_p10 = scmp.lt.s32.totalorder %s403_s20, %s1435_s16 }
 0x183   : > { %p1216_p9 = scmp.ne.s32.totalorder %s403_s20, %s1215_s11  ;;  %p1221_p12 = scmp.lt.s32.totalorder %s1458_s19, %s1215_s11 }
 0x185   : > { %p1222_p13 = por %p1221_p12, %p1220_p10 }
 0x187   : > { %p1223_p0 = pnand %p1222_p13, %p1216_p9 }
 0x189   : > { %1226 = shalt.err (!%p1223_p0)  }
 0x18a   : > { %405 = dma.hbm_to_vmem [thread:$0]  %s393_s9, 16, %s403_s20, [#allocation3 + $0x1]  ;;  %vm407_vm2 = vcmask 64512   ;;  %v484_v4 = vpop.xlane.xlu0 %483 }
 0x18b   : > { %v406_v3 = vld [vmem:[#allocation2] sm:$0xff]  ;;  %v485_v5 = vmax.f32 %v484_v4, 1e-09 }
 0x18c   : > { %746 = vmatpush3.msra.mxu0 %v406_v3 }
 0x18d   : > { %748 = vmatmul.mubr.msk.f32.vlgmr.msra.gmra.mrb[0].mxu0 %vm407_vm2, %v1439_v0  ;;  %829 = vrcp.f32 %v485_v5 }
 0x197   : > { %v830_v6 = vpop.eup %829 }
 0x260   : > { %v477_v7 = vpop.f32.mrb[0].mxu0 }
 0x261   : > { %v487_v8 = vmul.f32 %v830_v6, %v477_v7  ;;  %v749_v9 = vpop.f32.mrb[1].mxu0 }
 0x263   : > { %488 = vst [vmem:[%s1575_s2] sm:$0x1] %v487_v8 }
 0x264   : > { %1283 = dma.done.wait [#allocation3 + $0x1], 128 }
 0x265   : > { %1284 = vsyncadd [#allocation3 + $0x1], 4294967168  ;;  %750 = vmatprep.subr.mxu1 %v1323_v1  ;;  %752 = vmatprep.mubr.msk.f32.mxu1 %vm1324_vm0, %v1323_v1  ;;  %vm565_vm3 = vcmask 58369   ;;  %v492_v11 = vrot.slane %v1439_v0, 1  ;;  %v491_v12 = vld [vmem:[#allocation2 + $0x8] sm:$0xff]  ;;  %s735_s16 = sshll.u32 %s1303_s25, 5 }
 0x266   : > { %v566_v10 = vsel %vm565_vm3, %v1439_v0, 0.0  ;;  %751 = vmatpush3.msra.mxu1 %v491_v12  ;;  %s591_s14 = sshll.u32 %s1575_s2, 4  ;;  %s1714_s21 = scalar_lea.hbm %s1767_s3, %s735_s16  ;;  %s1716_s14 = int_to_ptr.vmem [resolvable:$true] %s591_s14 }
 0x267   : > { %567 = vadd.xlane.f32.xlu0 %v566_v10  ;;  %753 = vmatmul.mubr.msk.f32.vlgmr.msra.gmra.mrb[0].mxu1 %vm407_vm2, %v492_v11  ;;  %s1778_s28 = sand.u32 1, %s1295_s23   ;;  %s1227_s26 = scalar_lea.vmem %s1716_s14, 32 }
 0x268   : > { %s577_s13 = scalar_lea.sflag [#allocation7], %s1778_s28  ;;  %p1228_p1 = scmp.ne.s32.totalorder %s1716_s14, %s1227_s26 }
 0x269   : > { %s1332_s25 = smov [#allocation6]  }
 0x26a   : > { %p1229_p2 = pnand %p1228_p1, %p1405_p7  ;;  %s1231_s12 = sshll.u32 %s1332_s25, 4  ;;  %s1232_s12 = int_to_ptr.vmem [resolvable:$false] %s1231_s12 }
 0x26b   : > { %s1233_s7 = scalar_lea.vmem %s1232_s12, 64  ;;  %p1234_p4 = scmp.lt.s32.totalorder %s1716_s14, %s1232_s12 }
 0x26c   : > { %p1230_p3 = pneg %p1229_p2  ;;  %p1235_p5 = scmp.lt.s32.totalorder %s1233_s7, %s1227_s26 }
 0x26e   : > { %p1236_p6 = por %p1235_p5, %p1234_p4 }
 0x270   : > { %p1237_p8 = pnand %p1236_p6, %p1230_p3 }
 0x2f4   : > { %v568_v13 = vpop.xlane.xlu0 %567 }
 0x2f5   : > { %v569_v14 = vmax.f32 %v568_v13, 1e-09 }
 0x2f7   : > { %831 = vrcp.f32 %v569_v14 }
 0x301   : > { %v832_v15 = vpop.eup %831 }
 0x302   : > { %v572_v16 = vrot.slane %v832_v15, 1 }
 0x33a   : > { %v561_v17 = vpop.f32.mrb[0].mxu1 }
 0x33b   : > { %v574_v18 = vmul.f32 %v572_v16, %v561_v17  ;;  %v754_v19 = vpop.f32.mrb[1].mxu1 }
 0x33d   : > { %575 = vst [vmem:[%s1575_s2 + $0x1] sm:$0x1] %v574_v18 }
 0x33e   : > { %1240 = shalt.err (!%p1237_p8)
}
 0x33f   : > { %s1241_s2 = scalar_lea.hbm %s1714_s21, 32  ;;  %s1245_s20 = scalar_lea.hbm %s1767_s3, 64 }
 0x340   : > { %p1242_p9 = scmp.ne.s32.totalorder %s1714_s21, %s1241_s2  ;;  %p1246_p13 = scmp.lt.u32.totalorder %s1714_s21, %s1767_s3 }
 0x341   : > { %p1247_p0 = scmp.lt.u32.totalorder %s1245_s20, %s1241_s2  ;;  %p1249_p2 = scmp.lt.u32.totalorder %s1241_s2, %s1714_s21 }
 0x342   : > { %p1243_p10 = pnand %p1242_p9, %p1405_p7 }
 0x343   : > { %p1248_p1 = por %p1247_p0, %p1246_p13 }
 0x344   : > { %p1244_p12 = pneg %p1243_p10 }
 0x345   : > { %p1250_p3 = por %p1249_p2, %p1248_p1 }
 0x347   : > { %p1251_p4 = pnand %p1250_p3, %p1244_p12 }
 0x349   : > { %1254 = shalt.err (!%p1251_p4)
}
 0x34a   : > { %755 = dma.vmem_to_hbm [thread:$0]  (%p1405_p7), %s1716_s14, 32, %s1714_s21, %s577_s13  }
 0x34b PF: > { %p761_p5 = scmp.ge.s32.totalorder %s1311_s27, 2  ;;  %s603_s5 = sand.u32 1, %s1291_s22  }
 0x34c   : > { %s604_s9 = scalar_lea.sflag [#allocation7], %s603_s5 }
 0x34d   : > { %p758_p6 = pnand %p761_p5, %p1412_p11 }
 0x34f   : > { %1286 = dma.done.wait (!%p758_p6), %s604_s9, 32  }
 0x350   : > { %1288 = vsyncadd (!%p758_p6), %s604_s9, 4294967264  ;;  %s20_s27 = sadd.s32 1, %s1311_s27   ;;  %s1779_s4 = sld [smem:[#allocation48_spill]] }
 0x351   : > { %p17_p8 = scmp.ge.s32.totalorder %s20_s27, 4   ;;  %s1780_s25 = sld [smem:[#allocation46_spill]] }
 0x352   : > { %s1781_s26 = sld [smem:[#allocation47_spill]]  ;;  %s1782_s22 = smov %s1295_s23 }
 0x353   : > { %s1783_s23 = smov %s1299_s24  ;;  %19 = sbr.rel (!%p17_p8) target bundleno = 16 (0x10), region = 156 }
 0x356   : > { %s1784_s24 = smov %s1779_s4 }
 0x35a   :  { %609 = vsyncpa [#allocation7], 1 }
 0x35b   :  { %611 = vsyncpa [#allocation7 + $0x1], 1 }
 0x35c   :  { %612 = vsyncmov [#allocation3] }
 0x35f   :  { %s613_s6 = vpop.sfrf %612 }
 0x360   :  { %p738_p7 = scmp.ne.s32.totalorder %s613_s6, 0 }
 0x362   :  { %617 = shalt.err (%p738_p7)  }
 0x363   :  { %619 = vsyncmov [#allocation3 + $0x1] }
 0x366   :  { %s620_s15 = vpop.sfrf %619 }
 0x367   :  { %p739_p11 = scmp.ne.s32.totalorder %s620_s15, 0 }
 0x369   :  { %624 = shalt.err (%p739_p11)  }

</bundles_post_ra>
